<compile_context>
chip_gen: v7x
topology: tpu7x:2x2x1
jax: 0.10.0
libtpu: 0.0.40
codegen_flags: <defaults>
</compile_context>

<pallas_src>
import jax
import jax.numpy as jnp
from jax import lax
from jax.experimental import pallas as pl
from jax.experimental.pallas import tpu as pltpu


def _conv3x3_relu_kernel(x_ref, w_ref, b_ref, o_ref, buf_ref, col_ref):
    """One (batch n, row-tile r) grid step of Conv2d(3x3, s=1, p=1) + ReLU.

    x_ref:   (Cin, H, W)          full NCHW image of batch n (resident across r)
    w_ref:   (Cout, 9*Cin)        weights, tap-major (kh, kw, ci)
    b_ref:   (Cout, 1)            bias
    o_ref:   (Cout, TH*W)         output tile; lane dim = flat spatial (mult of 128)
    buf_ref: (Cin, (TH+2)*W + 2)  flat halo'd tile: rows r0-1..r0+TH at offset 1
                                  (+1 sentinel element on each end)
    col_ref: (9*Cin, TH*W)        im2col matrix, [K, N] -> MXU reads it directly
    """
    Cin, H, W = x_ref.shape
    THW = o_ref.shape[1]
    TH = THW // W

    r = pl.program_id(1)
    n_r = pl.num_programs(1)
    r0 = pl.multiple_of(r * TH, TH)

    # ---- Build the flat halo'd tile: global rows r0-1 .. r0+TH, clamped at the
    # image boundary and zeroed when out of range.  No full-buffer memset:
    # every chunk is written exactly once per step.  (Static unroll: TH is
    # small for these shapes; a bulk copy would be used for very large TH.)
    for k in range(TH + 2):
        row = jnp.clip(r0 + (k - 1), 0, H - 1)
        v = x_ref[:, row, :]                         # (Cin, W)
        if k == 0:
            v = jnp.where(r > 0, v, 0.0)             # top halo outside image
        elif k == TH + 1:
            v = jnp.where(r < n_r - 1, v, 0.0)       # bottom halo outside image
        buf_ref[:, 1 + k * W:1 + (k + 1) * W] = v.astype(buf_ref.dtype)
    # Sentinels (only ever read at positions that get masked below).
    zcol = jnp.zeros((Cin, 1), buf_ref.dtype)
    buf_ref[:, 0:1] = zcol
    buf_ref[:, (TH + 2) * W + 1:(TH + 2) * W + 2] = zcol

    # Lane masks implementing the width-direction zero padding (and preventing
    # row wrap-around in the flat layout): output column j = p % W.
    j = lax.broadcasted_iota(jnp.int32, (1, THW), 1) % W
    ok_l = j >= 1          # valid source column for kw == 0 (dw = -1)
    ok_r = j <= W - 2      # valid source column for kw == 2 (dw = +1)

    # ---- im2col directly into [K, N]; every store is full TH*W lanes wide.
    for kh in range(3):
        for kw in range(3):
            t = kh * 3 + kw
            s = 1 + kh * W + (kw - 1)                # static start in flat buffer
            patch = buf_ref[:, s:s + THW]            # (Cin, TH*W)
            if kw == 0:
                patch = jnp.where(ok_l, patch, 0.0)
            elif kw == 2:
                patch = jnp.where(ok_r, patch, 0.0)
            col_ref[t * Cin:(t + 1) * Cin, :] = patch.astype(col_ref.dtype)

    # ---- One fused MXU matmul: (Cout, 9*Cin) @ (9*Cin, TH*W) -> (Cout, TH*W).
    acc = lax.dot_general(
        w_ref[...], col_ref[...],
        dimension_numbers=(((1,), (0,)), ((), ())),
        preferred_element_type=jnp.float32)
    acc = jnp.maximum(acc + b_ref[...], 0.0)         # bias + ReLU
    o_ref[...] = acc.astype(o_ref.dtype)             # lane-dense store


def _vmem_bytes_estimate(Cin, Cout, H, W, TH, itemsize):
    img = Cin * H * W * itemsize                     # resident input block
    buf = Cin * ((TH + 2) * W + 2) * itemsize        # halo'd flat tile
    col = 9 * Cin * TH * W * itemsize                # im2col scratch
    out = Cout * TH * W * itemsize                   # output block
    wgt = (Cout * 9 * Cin + Cout) * itemsize
    return 2 * img + buf + col + 2 * out + 2 * wgt   # in/out double-buffered


def _pick_row_tile(Cin, Cout, H, W, itemsize, budget_bytes=40 << 20):
    """Largest TH that divides H, keeps TH % 8 == 0 and (TH*W) % 128 == 0
    (sublane-aligned slices, lane-dense output blocks) and fits the VMEM
    budget.  Fallback TH = H (block == full dims) is always legal."""
    for th in range(H, 0, -1):
        if H % th or th % 8 or (th * W) % 128:
            continue
        if _vmem_bytes_estimate(Cin, Cout, H, W, th, itemsize) <= budget_bytes:
            return th
    return H


def conv_layer_1_forward(x_nchw, w_oihw, bias):
    """Equivalent of `F.relu(nn.Conv2d(Cin, Cout, 3, 1, 1)(x))` on NCHW input."""
    N, Cin, H, W = x_nchw.shape
    Cout = w_oihw.shape[0]
    itemsize = jnp.dtype(x_nchw.dtype).itemsize
    TH = _pick_row_tile(Cin, Cout, H, W, itemsize)
    n_row_tiles = H // TH

    # Weight / bias plumbing only (input is consumed NCHW directly, output is
    # produced NCHW directly; the final reshape is a free row-major view).
    w2 = jnp.transpose(w_oihw, (0, 2, 3, 1)).reshape(Cout, 9 * Cin)
    b2 = bias.reshape(Cout, 1)

    est = _vmem_bytes_estimate(Cin, Cout, H, W, TH, itemsize)
    vmem_limit = int(min(48 << 20, max(16 << 20, 2 * est)))   # v7x-safe cap

    out_flat = pl.pallas_call(
        _conv3x3_relu_kernel,
        out_shape=jax.ShapeDtypeStruct((N, Cout, H * W), x_nchw.dtype),
        grid=(N, n_row_tiles),
        in_specs=[
            # Whole image of batch n stays resident while its row tiles iterate.
            pl.BlockSpec((None, Cin, H, W), lambda n, r: (n, 0, 0, 0)),
            pl.BlockSpec((Cout, 9 * Cin), lambda n, r: (0, 0)),
            pl.BlockSpec((Cout, 1), lambda n, r: (0, 0)),
        ],
        # Output tile (Cout, TH*W): last dim multiple of 128 -> dense vst.
        out_specs=pl.BlockSpec((None, Cout, TH * W), lambda n, r: (n, 0, r)),
        scratch_shapes=[
            pltpu.VMEM((Cin, (TH + 2) * W + 2), x_nchw.dtype),   # halo'd flat tile
            pltpu.VMEM((9 * Cin, TH * W), x_nchw.dtype),         # im2col [K, N]
        ],
        compiler_params=pltpu.CompilerParams(
            # Batch is the core-parallel axis (disjoint images per TensorCore);
            # row tiles iterate sequentially within a core.
            dimension_semantics=("parallel", "arbitrary"),
            vmem_limit_bytes=vmem_limit,
        ),
    )(x_nchw, w2, b2)

    # Free row-major reshape: the kernel already produced NCHW data.
    return out_flat.reshape(N, Cout, H, W)


if __name__ == "__main__":
    # Small shapes consistent with the module: batch=2, channel_in=4,
    # channel_out=8, spatial=16x16.
    N, Cin, Cout, H, W = 2, 4, 8, 16, 16

    key = jax.random.PRNGKey(0)
    kx, kw, kb = jax.random.split(key, 3)
    x = jax.random.normal(kx, (N, Cin, H, W), dtype=jnp.float32)
    bound = 1.0 / (Cin * 3 * 3) ** 0.5
    w = jax.random.uniform(kw, (Cout, Cin, 3, 3), jnp.float32, -bound, bound)
    b = jax.random.uniform(kb, (Cout,), jnp.float32, -bound, bound)

    out = jax.block_until_ready(conv_layer_1_forward(x, w, b))

    # Reference: XLA conv with the same semantics as the PyTorch module.
    ref = lax.conv_general_dilated(
        x, w, window_strides=(1, 1), padding=((1, 1), (1, 1)),
        dimension_numbers=("NCHW", "OIHW", "NCHW"))
    ref = jnp.maximum(ref + b.reshape(1, Cout, 1, 1), 0.0)
    assert out.shape == (N, Cout, H, W)
    assert jnp.allclose(out, ref, atol=1e-5, rtol=1e-5)

    print("KERNEL_OK")
</pallas_src>

<mosaic_0001>
module attributes {stable_mosaic.version = 11 : i64} {
  func.func @_conv3x3_relu_kernel(%arg0: i32, %arg1: i32, %arg2: memref<1x4x16x16xf32, #tpu.memory_space<vmem>>, %arg3: memref<8x36xf32, #tpu.memory_space<vmem>>, %arg4: memref<8x1xf32, #tpu.memory_space<vmem>>, %arg5: memref<1x8x256xf32, #tpu.memory_space<vmem>>, %arg6: memref<4x290xf32, #tpu.memory_space<vmem>>, %arg7: memref<36x256xf32, #tpu.memory_space<vmem>>) attributes {dimension_semantics = [#tpu.dimension_semantics<parallel>, #tpu.dimension_semantics<arbitrary>], iteration_bounds = array<i64: 2, 1>, scalar_prefetch = 0 : i64, scratch_operands = 2 : i64, tpu.core_type = #tpu.core_type<tc>, window_params = [{transform_indices = @transform_0, window_bounds = array<i64: 1, 4, 16, 16>}, {pipeline_mode = #tpu.pipeline_mode<synchronous>, transform_indices = @transform_1, window_bounds = array<i64: 8, 36>}, {pipeline_mode = #tpu.pipeline_mode<synchronous>, transform_indices = @transform_2, window_bounds = array<i64: 8, 1>}, {transform_indices = @transform_3, window_bounds = array<i64: 1, 8, 256>}]} {
    %c16_i32 = arith.constant 16 : i32
    %0 = arith.muli %arg1, %c16_i32 : i32
    %1 = tpu.assume_multiple %0, 16 : i32
    %c-1_i32 = arith.constant -1 : i32
    %2 = arith.addi %1, %c-1_i32 : i32
    %c0_i32 = arith.constant 0 : i32
    %c15_i32 = arith.constant 15 : i32
    %3 = arith.maxsi %c0_i32, %2 : i32
    %4 = arith.minsi %c15_i32, %3 : i32
    %c0 = arith.constant 0 : index
    %c0_0 = arith.constant 0 : index
    %5 = arith.index_cast %4 : i32 to index
    %c0_1 = arith.constant 0 : index
    %6 = vector.load %arg2[%c0, %c0_0, %5, %c0_1] : memref<1x4x16x16xf32, #tpu.memory_space<vmem>>, vector<1x4x1x16xf32>
    %7 = vector.shape_cast %6 : vector<1x4x1x16xf32> to vector<4x16xf32>
    %c0_i32_2 = arith.constant 0 : i32
    %8 = arith.cmpi sgt, %arg1, %c0_i32_2 : i32
    %cst = arith.constant 0.000000e+00 : f32
    %9 = vector.broadcast %cst : f32 to vector<4x16xf32>
    %10 = arith.select %8, %7, %9 : vector<4x16xf32>
    %c0_3 = arith.constant 0 : index
    %c1 = arith.constant 1 : index
    %11 = vector.load %arg6[%c0_3, %c1] : memref<4x290xf32, #tpu.memory_space<vmem>>, vector<4x16xf32>
    tpu.vector_store %arg6[%c0_3, %c1], %10 {strides = array<i32>} : memref<4x290xf32, #tpu.memory_space<vmem>>, vector<4x16xf32>,
    %c0_i32_4 = arith.constant 0 : i32
    %12 = arith.addi %1, %c0_i32_4 : i32
    %c0_i32_5 = arith.constant 0 : i32
    %c15_i32_6 = arith.constant 15 : i32
    %13 = arith.maxsi %c0_i32_5, %12 : i32
    %14 = arith.minsi %c15_i32_6, %13 : i32
    %c0_7 = arith.constant 0 : index
    %c0_8 = arith.constant 0 : index
    %15 = arith.index_cast %14 : i32 to index
    %c0_9 = arith.constant 0 : index
    %16 = vector.load %arg2[%c0_7, %c0_8, %15, %c0_9] : memref<1x4x16x16xf32, #tpu.memory_space<vmem>>, vector<1x4x1x16xf32>
    %17 = vector.shape_cast %16 : vector<1x4x1x16xf32> to vector<4x16xf32>
    %c0_10 = arith.constant 0 : index
    %c17 = arith.constant 17 : index
    %18 = vector.load %arg6[%c0_10, %c17] : memref<4x290xf32, #tpu.memory_space<vmem>>, vector<4x16xf32>
    tpu.vector_store %arg6[%c0_10, %c17], %17 {strides = array<i32>} : memref<4x290xf32, #tpu.memory_space<vmem>>, vector<4x16xf32>,
    %c1_i32 = arith.constant 1 : i32
    %19 = arith.addi %1, %c1_i32 : i32
    %c0_i32_11 = arith.constant 0 : i32
    %c15_i32_12 = arith.constant 15 : i32
    %20 = arith.maxsi %c0_i32_11, %19 : i32
    %21 = arith.minsi %c15_i32_12, %20 : i32
    %c0_13 = arith.constant 0 : index
    %c0_14 = arith.constant 0 : index
    %22 = arith.index_cast %21 : i32 to index
    %c0_15 = arith.constant 0 : index
    %23 = vector.load %arg2[%c0_13, %c0_14, %22, %c0_15] : memref<1x4x16x16xf32, #tpu.memory_space<vmem>>, vector<1x4x1x16xf32>
    %24 = vector.shape_cast %23 : vector<1x4x1x16xf32> to vector<4x16xf32>
    %c0_16 = arith.constant 0 : index
    %c33 = arith.constant 33 : index
    %25 = vector.load %arg6[%c0_16, %c33] : memref<4x290xf32, #tpu.memory_space<vmem>>, vector<4x16xf32>
    tpu.vector_store %arg6[%c0_16, %c33], %24 {strides = array<i32>} : memref<4x290xf32, #tpu.memory_space<vmem>>, vector<4x16xf32>,
    %c2_i32 = arith.constant 2 : i32
    %26 = arith.addi %1, %c2_i32 : i32
    %c0_i32_17 = arith.constant 0 : i32
    %c15_i32_18 = arith.constant 15 : i32
    %27 = arith.maxsi %c0_i32_17, %26 : i32
    %28 = arith.minsi %c15_i32_18, %27 : i32
    %c0_19 = arith.constant 0 : index
    %c0_20 = arith.constant 0 : index
    %29 = arith.index_cast %28 : i32 to index
    %c0_21 = arith.constant 0 : index
    %30 = vector.load %arg2[%c0_19, %c0_20, %29, %c0_21] : memref<1x4x16x16xf32, #tpu.memory_space<vmem>>, vector<1x4x1x16xf32>
    %31 = vector.shape_cast %30 : vector<1x4x1x16xf32> to vector<4x16xf32>
    %c0_22 = arith.constant 0 : index
    %c49 = arith.constant 49 : index
    %32 = vector.load %arg6[%c0_22, %c49] : memref<4x290xf32, #tpu.memory_space<vmem>>, vector<4x16xf32>
    tpu.vector_store %arg6[%c0_22, %c49], %31 {strides = array<i32>} : memref<4x290xf32, #tpu.memory_space<vmem>>, vector<4x16xf32>,
    %c3_i32 = arith.constant 3 : i32
    %33 = arith.addi %1, %c3_i32 : i32
    %c0_i32_23 = arith.constant 0 : i32
    %c15_i32_24 = arith.constant 15 : i32
    %34 = arith.maxsi %c0_i32_23, %33 : i32
    %35 = arith.minsi %c15_i32_24, %34 : i32
    %c0_25 = arith.constant 0 : index
    %c0_26 = arith.constant 0 : index
    %36 = arith.index_cast %35 : i32 to index
    %c0_27 = arith.constant 0 : index
    %37 = vector.load %arg2[%c0_25, %c0_26, %36, %c0_27] : memref<1x4x16x16xf32, #tpu.memory_space<vmem>>, vector<1x4x1x16xf32>
    %38 = vector.shape_cast %37 : vector<1x4x1x16xf32> to vector<4x16xf32>
    %c0_28 = arith.constant 0 : index
    %c65 = arith.constant 65 : index
    %39 = vector.load %arg6[%c0_28, %c65] : memref<4x290xf32, #tpu.memory_space<vmem>>, vector<4x16xf32>
    tpu.vector_store %arg6[%c0_28, %c65], %38 {strides = array<i32>} : memref<4x290xf32, #tpu.memory_space<vmem>>, vector<4x16xf32>,
    %c4_i32 = arith.constant 4 : i32
    %40 = arith.addi %1, %c4_i32 : i32
    %c0_i32_29 = arith.constant 0 : i32
    %c15_i32_30 = arith.constant 15 : i32
    %41 = arith.maxsi %c0_i32_29, %40 : i32
    %42 = arith.minsi %c15_i32_30, %41 : i32
    %c0_31 = arith.constant 0 : index
    %c0_32 = arith.constant 0 : index
    %43 = arith.index_cast %42 : i32 to index
    %c0_33 = arith.constant 0 : index
    %44 = vector.load %arg2[%c0_31, %c0_32, %43, %c0_33] : memref<1x4x16x16xf32, #tpu.memory_space<vmem>>, vector<1x4x1x16xf32>
    %45 = vector.shape_cast %44 : vector<1x4x1x16xf32> to vector<4x16xf32>
    %c0_34 = arith.constant 0 : index
    %c81 = arith.constant 81 : index
    %46 = vector.load %arg6[%c0_34, %c81] : memref<4x290xf32, #tpu.memory_space<vmem>>, vector<4x16xf32>
    tpu.vector_store %arg6[%c0_34, %c81], %45 {strides = array<i32>} : memref<4x290xf32, #tpu.memory_space<vmem>>, vector<4x16xf32>,
    %c5_i32 = arith.constant 5 : i32
    %47 = arith.addi %1, %c5_i32 : i32
    %c0_i32_35 = arith.constant 0 : i32
    %c15_i32_36 = arith.constant 15 : i32
    %48 = arith.maxsi %c0_i32_35, %47 : i32
    %49 = arith.minsi %c15_i32_36, %48 : i32
    %c0_37 = arith.constant 0 : index
    %c0_38 = arith.constant 0 : index
    %50 = arith.index_cast %49 : i32 to index
    %c0_39 = arith.constant 0 : index
    %51 = vector.load %arg2[%c0_37, %c0_38, %50, %c0_39] : memref<1x4x16x16xf32, #tpu.memory_space<vmem>>, vector<1x4x1x16xf32>
    %52 = vector.shape_cast %51 : vector<1x4x1x16xf32> to vector<4x16xf32>
    %c0_40 = arith.constant 0 : index
    %c97 = arith.constant 97 : index
    %53 = vector.load %arg6[%c0_40, %c97] : memref<4x290xf32, #tpu.memory_space<vmem>>, vector<4x16xf32>
    tpu.vector_store %arg6[%c0_40, %c97], %52 {strides = array<i32>} : memref<4x290xf32, #tpu.memory_space<vmem>>, vector<4x16xf32>,
    %c6_i32 = arith.constant 6 : i32
    %54 = arith.addi %1, %c6_i32 : i32
    %c0_i32_41 = arith.constant 0 : i32
    %c15_i32_42 = arith.constant 15 : i32
    %55 = arith.maxsi %c0_i32_41, %54 : i32
    %56 = arith.minsi %c15_i32_42, %55 : i32
    %c0_43 = arith.constant 0 : index
    %c0_44 = arith.constant 0 : index
    %57 = arith.index_cast %56 : i32 to index
    %c0_45 = arith.constant 0 : index
    %58 = vector.load %arg2[%c0_43, %c0_44, %57, %c0_45] : memref<1x4x16x16xf32, #tpu.memory_space<vmem>>, vector<1x4x1x16xf32>
    %59 = vector.shape_cast %58 : vector<1x4x1x16xf32> to vector<4x16xf32>
    %c0_46 = arith.constant 0 : index
    %c113 = arith.constant 113 : index
    %60 = vector.load %arg6[%c0_46, %c113] : memref<4x290xf32, #tpu.memory_space<vmem>>, vector<4x16xf32>
    tpu.vector_store %arg6[%c0_46, %c113], %59 {strides = array<i32>} : memref<4x290xf32, #tpu.memory_space<vmem>>, vector<4x16xf32>,
    %c7_i32 = arith.constant 7 : i32
    %61 = arith.addi %1, %c7_i32 : i32
    %c0_i32_47 = arith.constant 0 : i32
    %c15_i32_48 = arith.constant 15 : i32
    %62 = arith.maxsi %c0_i32_47, %61 : i32
    %63 = arith.minsi %c15_i32_48, %62 : i32
    %c0_49 = arith.constant 0 : index
    %c0_50 = arith.constant 0 : index
    %64 = arith.index_cast %63 : i32 to index
    %c0_51 = arith.constant 0 : index
    %65 = vector.load %arg2[%c0_49, %c0_50, %64, %c0_51] : memref<1x4x16x16xf32, #tpu.memory_space<vmem>>, vector<1x4x1x16xf32>
    %66 = vector.shape_cast %65 : vector<1x4x1x16xf32> to vector<4x16xf32>
    %c0_52 = arith.constant 0 : index
    %c129 = arith.constant 129 : index
    %67 = vector.load %arg6[%c0_52, %c129] : memref<4x290xf32, #tpu.memory_space<vmem>>, vector<4x16xf32>
    tpu.vector_store %arg6[%c0_52, %c129], %66 {strides = array<i32>} : memref<4x290xf32, #tpu.memory_space<vmem>>, vector<4x16xf32>,
    %c8_i32 = arith.constant 8 : i32
    %68 = arith.addi %1, %c8_i32 : i32
    %c0_i32_53 = arith.constant 0 : i32
    %c15_i32_54 = arith.constant 15 : i32
    %69 = arith.maxsi %c0_i32_53, %68 : i32
    %70 = arith.minsi %c15_i32_54, %69 : i32
    %c0_55 = arith.constant 0 : index
    %c0_56 = arith.constant 0 : index
    %71 = arith.index_cast %70 : i32 to index
    %c0_57 = arith.constant 0 : index
    %72 = vector.load %arg2[%c0_55, %c0_56, %71, %c0_57] : memref<1x4x16x16xf32, #tpu.memory_space<vmem>>, vector<1x4x1x16xf32>
    %73 = vector.shape_cast %72 : vector<1x4x1x16xf32> to vector<4x16xf32>
    %c0_58 = arith.constant 0 : index
    %c145 = arith.constant 145 : index
    %74 = vector.load %arg6[%c0_58, %c145] : memref<4x290xf32, #tpu.memory_space<vmem>>, vector<4x16xf32>
    tpu.vector_store %arg6[%c0_58, %c145], %73 {strides = array<i32>} : memref<4x290xf32, #tpu.memory_space<vmem>>, vector<4x16xf32>,
    %c9_i32 = arith.constant 9 : i32
    %75 = arith.addi %1, %c9_i32 : i32
    %c0_i32_59 = arith.constant 0 : i32
    %c15_i32_60 = arith.constant 15 : i32
    %76 = arith.maxsi %c0_i32_59, %75 : i32
    %77 = arith.minsi %c15_i32_60, %76 : i32
    %c0_61 = arith.constant 0 : index
    %c0_62 = arith.constant 0 : index
    %78 = arith.index_cast %77 : i32 to index
    %c0_63 = arith.constant 0 : index
    %79 = vector.load %arg2[%c0_61, %c0_62, %78, %c0_63] : memref<1x4x16x16xf32, #tpu.memory_space<vmem>>, vector<1x4x1x16xf32>
    %80 = vector.shape_cast %79 : vector<1x4x1x16xf32> to vector<4x16xf32>
    %c0_64 = arith.constant 0 : index
    %c161 = arith.constant 161 : index
    %81 = vector.load %arg6[%c0_64, %c161] : memref<4x290xf32, #tpu.memory_space<vmem>>, vector<4x16xf32>
    tpu.vector_store %arg6[%c0_64, %c161], %80 {strides = array<i32>} : memref<4x290xf32, #tpu.memory_space<vmem>>, vector<4x16xf32>,
    %c10_i32 = arith.constant 10 : i32
    %82 = arith.addi %1, %c10_i32 : i32
    %c0_i32_65 = arith.constant 0 : i32
    %c15_i32_66 = arith.constant 15 : i32
    %83 = arith.maxsi %c0_i32_65, %82 : i32
    %84 = arith.minsi %c15_i32_66, %83 : i32
    %c0_67 = arith.constant 0 : index
    %c0_68 = arith.constant 0 : index
    %85 = arith.index_cast %84 : i32 to index
    %c0_69 = arith.constant 0 : index
    %86 = vector.load %arg2[%c0_67, %c0_68, %85, %c0_69] : memref<1x4x16x16xf32, #tpu.memory_space<vmem>>, vector<1x4x1x16xf32>
    %87 = vector.shape_cast %86 : vector<1x4x1x16xf32> to vector<4x16xf32>
    %c0_70 = arith.constant 0 : index
    %c177 = arith.constant 177 : index
    %88 = vector.load %arg6[%c0_70, %c177] : memref<4x290xf32, #tpu.memory_space<vmem>>, vector<4x16xf32>
    tpu.vector_store %arg6[%c0_70, %c177], %87 {strides = array<i32>} : memref<4x290xf32, #tpu.memory_space<vmem>>, vector<4x16xf32>,
    %c11_i32 = arith.constant 11 : i32
    %89 = arith.addi %1, %c11_i32 : i32
    %c0_i32_71 = arith.constant 0 : i32
    %c15_i32_72 = arith.constant 15 : i32
    %90 = arith.maxsi %c0_i32_71, %89 : i32
    %91 = arith.minsi %c15_i32_72, %90 : i32
    %c0_73 = arith.constant 0 : index
    %c0_74 = arith.constant 0 : index
    %92 = arith.index_cast %91 : i32 to index
    %c0_75 = arith.constant 0 : index
    %93 = vector.load %arg2[%c0_73, %c0_74, %92, %c0_75] : memref<1x4x16x16xf32, #tpu.memory_space<vmem>>, vector<1x4x1x16xf32>
    %94 = vector.shape_cast %93 : vector<1x4x1x16xf32> to vector<4x16xf32>
    %c0_76 = arith.constant 0 : index
    %c193 = arith.constant 193 : index
    %95 = vector.load %arg6[%c0_76, %c193] : memref<4x290xf32, #tpu.memory_space<vmem>>, vector<4x16xf32>
    tpu.vector_store %arg6[%c0_76, %c193], %94 {strides = array<i32>} : memref<4x290xf32, #tpu.memory_space<vmem>>, vector<4x16xf32>,
    %c12_i32 = arith.constant 12 : i32
    %96 = arith.addi %1, %c12_i32 : i32
    %c0_i32_77 = arith.constant 0 : i32
    %c15_i32_78 = arith.constant 15 : i32
    %97 = arith.maxsi %c0_i32_77, %96 : i32
    %98 = arith.minsi %c15_i32_78, %97 : i32
    %c0_79 = arith.constant 0 : index
    %c0_80 = arith.constant 0 : index
    %99 = arith.index_cast %98 : i32 to index
    %c0_81 = arith.constant 0 : index
    %100 = vector.load %arg2[%c0_79, %c0_80, %99, %c0_81] : memref<1x4x16x16xf32, #tpu.memory_space<vmem>>, vector<1x4x1x16xf32>
    %101 = vector.shape_cast %100 : vector<1x4x1x16xf32> to vector<4x16xf32>
    %c0_82 = arith.constant 0 : index
    %c209 = arith.constant 209 : index
    %102 = vector.load %arg6[%c0_82, %c209] : memref<4x290xf32, #tpu.memory_space<vmem>>, vector<4x16xf32>
    tpu.vector_store %arg6[%c0_82, %c209], %101 {strides = array<i32>} : memref<4x290xf32, #tpu.memory_space<vmem>>, vector<4x16xf32>,
    %c13_i32 = arith.constant 13 : i32
    %103 = arith.addi %1, %c13_i32 : i32
    %c0_i32_83 = arith.constant 0 : i32
    %c15_i32_84 = arith.constant 15 : i32
    %104 = arith.maxsi %c0_i32_83, %103 : i32
    %105 = arith.minsi %c15_i32_84, %104 : i32
    %c0_85 = arith.constant 0 : index
    %c0_86 = arith.constant 0 : index
    %106 = arith.index_cast %105 : i32 to index
    %c0_87 = arith.constant 0 : index
    %107 = vector.load %arg2[%c0_85, %c0_86, %106, %c0_87] : memref<1x4x16x16xf32, #tpu.memory_space<vmem>>, vector<1x4x1x16xf32>
    %108 = vector.shape_cast %107 : vector<1x4x1x16xf32> to vector<4x16xf32>
    %c0_88 = arith.constant 0 : index
    %c225 = arith.constant 225 : index
    %109 = vector.load %arg6[%c0_88, %c225] : memref<4x290xf32, #tpu.memory_space<vmem>>, vector<4x16xf32>
    tpu.vector_store %arg6[%c0_88, %c225], %108 {strides = array<i32>} : memref<4x290xf32, #tpu.memory_space<vmem>>, vector<4x16xf32>,
    %c14_i32 = arith.constant 14 : i32
    %110 = arith.addi %1, %c14_i32 : i32
    %c0_i32_89 = arith.constant 0 : i32
    %c15_i32_90 = arith.constant 15 : i32
    %111 = arith.maxsi %c0_i32_89, %110 : i32
    %112 = arith.minsi %c15_i32_90, %111 : i32
    %c0_91 = arith.constant 0 : index
    %c0_92 = arith.constant 0 : index
    %113 = arith.index_cast %112 : i32 to index
    %c0_93 = arith.constant 0 : index
    %114 = vector.load %arg2[%c0_91, %c0_92, %113, %c0_93] : memref<1x4x16x16xf32, #tpu.memory_space<vmem>>, vector<1x4x1x16xf32>
    %115 = vector.shape_cast %114 : vector<1x4x1x16xf32> to vector<4x16xf32>
    %c0_94 = arith.constant 0 : index
    %c241 = arith.constant 241 : index
    %116 = vector.load %arg6[%c0_94, %c241] : memref<4x290xf32, #tpu.memory_space<vmem>>, vector<4x16xf32>
    tpu.vector_store %arg6[%c0_94, %c241], %115 {strides = array<i32>} : memref<4x290xf32, #tpu.memory_space<vmem>>, vector<4x16xf32>,
    %c15_i32_95 = arith.constant 15 : i32
    %117 = arith.addi %1, %c15_i32_95 : i32
    %c0_i32_96 = arith.constant 0 : i32
    %c15_i32_97 = arith.constant 15 : i32
    %118 = arith.maxsi %c0_i32_96, %117 : i32
    %119 = arith.minsi %c15_i32_97, %118 : i32
    %c0_98 = arith.constant 0 : index
    %c0_99 = arith.constant 0 : index
    %120 = arith.index_cast %119 : i32 to index
    %c0_100 = arith.constant 0 : index
    %121 = vector.load %arg2[%c0_98, %c0_99, %120, %c0_100] : memref<1x4x16x16xf32, #tpu.memory_space<vmem>>, vector<1x4x1x16xf32>
    %122 = vector.shape_cast %121 : vector<1x4x1x16xf32> to vector<4x16xf32>
    %c0_101 = arith.constant 0 : index
    %c257 = arith.constant 257 : index
    %123 = vector.load %arg6[%c0_101, %c257] : memref<4x290xf32, #tpu.memory_space<vmem>>, vector<4x16xf32>
    tpu.vector_store %arg6[%c0_101, %c257], %122 {strides = array<i32>} : memref<4x290xf32, #tpu.memory_space<vmem>>, vector<4x16xf32>,
    %c16_i32_102 = arith.constant 16 : i32
    %124 = arith.addi %1, %c16_i32_102 : i32
    %c0_i32_103 = arith.constant 0 : i32
    %c15_i32_104 = arith.constant 15 : i32
    %125 = arith.maxsi %c0_i32_103, %124 : i32
    %126 = arith.minsi %c15_i32_104, %125 : i32
    %c0_105 = arith.constant 0 : index
    %c0_106 = arith.constant 0 : index
    %127 = arith.index_cast %126 : i32 to index
    %c0_107 = arith.constant 0 : index
    %128 = vector.load %arg2[%c0_105, %c0_106, %127, %c0_107] : memref<1x4x16x16xf32, #tpu.memory_space<vmem>>, vector<1x4x1x16xf32>
    %129 = vector.shape_cast %128 : vector<1x4x1x16xf32> to vector<4x16xf32>
    %c0_i32_108 = arith.constant 0 : i32
    %130 = arith.cmpi slt, %arg1, %c0_i32_108 : i32
    %cst_109 = arith.constant 0.000000e+00 : f32
    %131 = vector.broadcast %cst_109 : f32 to vector<4x16xf32>
    %132 = arith.select %130, %129, %131 : vector<4x16xf32>
    %c0_110 = arith.constant 0 : index
    %c273 = arith.constant 273 : index
    %133 = vector.load %arg6[%c0_110, %c273] : memref<4x290xf32, #tpu.memory_space<vmem>>, vector<4x16xf32>
    tpu.vector_store %arg6[%c0_110, %c273], %132 {strides = array<i32>} : memref<4x290xf32, #tpu.memory_space<vmem>>, vector<4x16xf32>,
    %cst_111 = arith.constant 0.000000e+00 : f32
    %134 = vector.broadcast %cst_111 : f32 to vector<4x1xf32>
    %c0_112 = arith.constant 0 : index
    %c0_113 = arith.constant 0 : index
    %135 = vector.load %arg6[%c0_112, %c0_113] : memref<4x290xf32, #tpu.memory_space<vmem>>, vector<4x1xf32>
    tpu.vector_store %arg6[%c0_112, %c0_113], %134 {strides = array<i32>} : memref<4x290xf32, #tpu.memory_space<vmem>>, vector<4x1xf32>,
    %c0_114 = arith.constant 0 : index
    %c289 = arith.constant 289 : index
    %136 = vector.load %arg6[%c0_114, %c289] : memref<4x290xf32, #tpu.memory_space<vmem>>, vector<4x1xf32>
    tpu.vector_store %arg6[%c0_114, %c289], %134 {strides = array<i32>} : memref<4x290xf32, #tpu.memory_space<vmem>>, vector<4x1xf32>,
    %137 = tpu.iota {dimensions = array<i32: 1>} : vector<1x256xi32>
    %c16_i32_115 = arith.constant 16 : i32
    %c0_i32_116 = arith.constant 0 : i32
    %138 = arith.cmpi eq, %c16_i32_115, %c0_i32_116 : i32
    %c1_i32_117 = arith.constant 1 : i32
    %139 = arith.select %138, %c1_i32_117, %c16_i32_115 : i32
    %140 = vector.broadcast %139 : i32 to vector<1x256xi32>
    %141 = arith.remsi %137, %140 : vector<1x256xi32>
    %c0_i32_118 = arith.constant 0 : i32
    %142 = vector.broadcast %c0_i32_118 : i32 to vector<1x256xi32>
    %143 = arith.cmpi ne, %141, %142 : vector<1x256xi32>
    %c0_i32_119 = arith.constant 0 : i32
    %144 = vector.broadcast %c0_i32_119 : i32 to vector<1x256xi32>
    %145 = arith.cmpi slt, %141, %144 : vector<1x256xi32>
    %c0_i32_120 = arith.constant 0 : i32
    %146 = arith.cmpi slt, %139, %c0_i32_120 : i32
    %147 = vector.broadcast %146 : i1 to vector<1x256xi1>
    %148 = vector.broadcast %147 : vector<1x256xi1> to vector<1x256xi1>
    %149 = arith.xori %145, %148 : vector<1x256xi1>
    %150 = arith.andi %149, %143 : vector<1x256xi1>
    %151 = vector.broadcast %139 : i32 to vector<1x256xi32>
    %152 = arith.addi %141, %151 : vector<1x256xi32>
    %153 = arith.select %150, %152, %141 : vector<1x256xi1>, vector<1x256xi32>
    %c1_i32_121 = arith.constant 1 : i32
    %154 = vector.broadcast %c1_i32_121 : i32 to vector<1x256xi32>
    %155 = arith.cmpi sge, %153, %154 : vector<1x256xi32>
    %c14_i32_122 = arith.constant 14 : i32
    %156 = vector.broadcast %c14_i32_122 : i32 to vector<1x256xi32>
    %157 = arith.cmpi sle, %153, %156 : vector<1x256xi32>
    %c0_123 = arith.constant 0 : index
    %c0_124 = arith.constant 0 : index
    %158 = vector.load %arg6[%c0_123, %c0_124] : memref<4x290xf32, #tpu.memory_space<vmem>>, vector<4x256xf32>
    %cst_125 = arith.constant 0.000000e+00 : f32
    %159 = vector.shape_cast %155 : vector<1x256xi1> to vector<1x256xi1>
    %160 = vector.broadcast %159 : vector<1x256xi1> to vector<4x256xi1>
    %161 = vector.broadcast %cst_125 : f32 to vector<4x256xf32>
    %162 = arith.select %160, %158, %161 : vector<4x256xi1>, vector<4x256xf32>
    %c0_126 = arith.constant 0 : index
    %c0_127 = arith.constant 0 : index
    %163 = vector.load %arg7[%c0_126, %c0_127] : memref<36x256xf32, #tpu.memory_space<vmem>>, vector<4x256xf32>
    tpu.vector_store %arg7[%c0_126, %c0_127], %162 {strides = array<i32>} : memref<36x256xf32, #tpu.memory_space<vmem>>, vector<4x256xf32>,
    %c0_128 = arith.constant 0 : index
    %c1_129 = arith.constant 1 : index
    %164 = vector.load %arg6[%c0_128, %c1_129] : memref<4x290xf32, #tpu.memory_space<vmem>>, vector<4x256xf32>
    %c4 = arith.constant 4 : index
    %c0_130 = arith.constant 0 : index
    %165 = vector.load %arg7[%c4, %c0_130] : memref<36x256xf32, #tpu.memory_space<vmem>>, vector<4x256xf32>
    tpu.vector_store %arg7[%c4, %c0_130], %164 {strides = array<i32>} : memref<36x256xf32, #tpu.memory_space<vmem>>, vector<4x256xf32>,
    %c0_131 = arith.constant 0 : index
    %c2 = arith.constant 2 : index
    %166 = vector.load %arg6[%c0_131, %c2] : memref<4x290xf32, #tpu.memory_space<vmem>>, vector<4x256xf32>
    %cst_132 = arith.constant 0.000000e+00 : f32
    %167 = vector.shape_cast %157 : vector<1x256xi1> to vector<1x256xi1>
    %168 = vector.broadcast %167 : vector<1x256xi1> to vector<4x256xi1>
    %169 = vector.broadcast %cst_132 : f32 to vector<4x256xf32>
    %170 = arith.select %168, %166, %169 : vector<4x256xi1>, vector<4x256xf32>
    %c8 = arith.constant 8 : index
    %c0_133 = arith.constant 0 : index
    %171 = vector.load %arg7[%c8, %c0_133] : memref<36x256xf32, #tpu.memory_space<vmem>>, vector<4x256xf32>
    tpu.vector_store %arg7[%c8, %c0_133], %170 {strides = array<i32>} : memref<36x256xf32, #tpu.memory_space<vmem>>, vector<4x256xf32>,
    %c0_134 = arith.constant 0 : index
    %c16 = arith.constant 16 : index
    %172 = vector.load %arg6[%c0_134, %c16] : memref<4x290xf32, #tpu.memory_space<vmem>>, vector<4x256xf32>
    %cst_135 = arith.constant 0.000000e+00 : f32
    %173 = vector.shape_cast %155 : vector<1x256xi1> to vector<1x256xi1>
    %174 = vector.broadcast %173 : vector<1x256xi1> to vector<4x256xi1>
    %175 = vector.broadcast %cst_135 : f32 to vector<4x256xf32>
    %176 = arith.select %174, %172, %175 : vector<4x256xi1>, vector<4x256xf32>
    %c12 = arith.constant 12 : index
    %c0_136 = arith.constant 0 : index
    %177 = vector.load %arg7[%c12, %c0_136] : memref<36x256xf32, #tpu.memory_space<vmem>>, vector<4x256xf32>
    tpu.vector_store %arg7[%c12, %c0_136], %176 {strides = array<i32>} : memref<36x256xf32, #tpu.memory_space<vmem>>, vector<4x256xf32>,
    %c0_137 = arith.constant 0 : index
    %c17_138 = arith.constant 17 : index
    %178 = vector.load %arg6[%c0_137, %c17_138] : memref<4x290xf32, #tpu.memory_space<vmem>>, vector<4x256xf32>
    %c16_139 = arith.constant 16 : index
    %c0_140 = arith.constant 0 : index
    %179 = vector.load %arg7[%c16_139, %c0_140] : memref<36x256xf32, #tpu.memory_space<vmem>>, vector<4x256xf32>
    tpu.vector_store %arg7[%c16_139, %c0_140], %178 {strides = array<i32>} : memref<36x256xf32, #tpu.memory_space<vmem>>, vector<4x256xf32>,
    %c0_141 = arith.constant 0 : index
    %c18 = arith.constant 18 : index
    %180 = vector.load %arg6[%c0_141, %c18] : memref<4x290xf32, #tpu.memory_space<vmem>>, vector<4x256xf32>
    %cst_142 = arith.constant 0.000000e+00 : f32
    %181 = vector.shape_cast %157 : vector<1x256xi1> to vector<1x256xi1>
    %182 = vector.broadcast %181 : vector<1x256xi1> to vector<4x256xi1>
    %183 = vector.broadcast %cst_142 : f32 to vector<4x256xf32>
    %184 = arith.select %182, %180, %183 : vector<4x256xi1>, vector<4x256xf32>
    %c20 = arith.constant 20 : index
    %c0_143 = arith.constant 0 : index
    %185 = vector.load %arg7[%c20, %c0_143] : memref<36x256xf32, #tpu.memory_space<vmem>>, vector<4x256xf32>
    tpu.vector_store %arg7[%c20, %c0_143], %184 {strides = array<i32>} : memref<36x256xf32, #tpu.memory_space<vmem>>, vector<4x256xf32>,
    %c0_144 = arith.constant 0 : index
    %c32 = arith.constant 32 : index
    %186 = vector.load %arg6[%c0_144, %c32] : memref<4x290xf32, #tpu.memory_space<vmem>>, vector<4x256xf32>
    %cst_145 = arith.constant 0.000000e+00 : f32
    %187 = vector.shape_cast %155 : vector<1x256xi1> to vector<1x256xi1>
    %188 = vector.broadcast %187 : vector<1x256xi1> to vector<4x256xi1>
    %189 = vector.broadcast %cst_145 : f32 to vector<4x256xf32>
    %190 = arith.select %188, %186, %189 : vector<4x256xi1>, vector<4x256xf32>
    %c24 = arith.constant 24 : index
    %c0_146 = arith.constant 0 : index
    %191 = vector.load %arg7[%c24, %c0_146] : memref<36x256xf32, #tpu.memory_space<vmem>>, vector<4x256xf32>
    tpu.vector_store %arg7[%c24, %c0_146], %190 {strides = array<i32>} : memref<36x256xf32, #tpu.memory_space<vmem>>, vector<4x256xf32>,
    %c0_147 = arith.constant 0 : index
    %c33_148 = arith.constant 33 : index
    %192 = vector.load %arg6[%c0_147, %c33_148] : memref<4x290xf32, #tpu.memory_space<vmem>>, vector<4x256xf32>
    %c28 = arith.constant 28 : index
    %c0_149 = arith.constant 0 : index
    %193 = vector.load %arg7[%c28, %c0_149] : memref<36x256xf32, #tpu.memory_space<vmem>>, vector<4x256xf32>
    tpu.vector_store %arg7[%c28, %c0_149], %192 {strides = array<i32>} : memref<36x256xf32, #tpu.memory_space<vmem>>, vector<4x256xf32>,
    %c0_150 = arith.constant 0 : index
    %c34 = arith.constant 34 : index
    %194 = vector.load %arg6[%c0_150, %c34] : memref<4x290xf32, #tpu.memory_space<vmem>>, vector<4x256xf32>
    %cst_151 = arith.constant 0.000000e+00 : f32
    %195 = vector.shape_cast %157 : vector<1x256xi1> to vector<1x256xi1>
    %196 = vector.broadcast %195 : vector<1x256xi1> to vector<4x256xi1>
    %197 = vector.broadcast %cst_151 : f32 to vector<4x256xf32>
    %198 = arith.select %196, %194, %197 : vector<4x256xi1>, vector<4x256xf32>
    %c32_152 = arith.constant 32 : index
    %c0_153 = arith.constant 0 : index
    %199 = vector.load %arg7[%c32_152, %c0_153] : memref<36x256xf32, #tpu.memory_space<vmem>>, vector<4x256xf32>
    tpu.vector_store %arg7[%c32_152, %c0_153], %198 {strides = array<i32>} : memref<36x256xf32, #tpu.memory_space<vmem>>, vector<4x256xf32>,
    %c0_154 = arith.constant 0 : index
    %c0_155 = arith.constant 0 : index
    %200 = vector.load %arg3[%c0_154, %c0_155] : memref<8x36xf32, #tpu.memory_space<vmem>>, vector<8x36xf32>
    %c0_156 = arith.constant 0 : index
    %c0_157 = arith.constant 0 : index
    %201 = vector.load %arg7[%c0_156, %c0_157] : memref<36x256xf32, #tpu.memory_space<vmem>>, vector<36x256xf32>
    %cst_158 = arith.constant dense<0.000000e+00> : vector<8x256xf32>
    %202 = tpu.matmul %200, %201, %cst_158 {dimension_numbers = #tpu.dot_dimension_numbers<[1], [0], [0], [1], [0, 0, 1, 1], [], []>} : vector<8x36xf32>, vector<36x256xf32>, vector<8x256xf32> -> vector<8x256xf32>
    %c0_159 = arith.constant 0 : index
    %c0_160 = arith.constant 0 : index
    %203 = vector.load %arg4[%c0_159, %c0_160] : memref<8x1xf32, #tpu.memory_space<vmem>>, vector<8x1xf32>
    %204 = vector.broadcast %203 : vector<8x1xf32> to vector<8x256xf32>
    %205 = arith.addf %202, %204 : vector<8x256xf32>
    %cst_161 = arith.constant 0.000000e+00 : f32
    %206 = vector.broadcast %cst_161 : f32 to vector<8x256xf32>
    %207 = arith.maximumf %205, %206 : vector<8x256xf32>
    %c0_162 = arith.constant 0 : index
    %c0_163 = arith.constant 0 : index
    %c0_164 = arith.constant 0 : index
    %208 = vector.load %arg5[%c0_162, %c0_163, %c0_164] : memref<1x8x256xf32, #tpu.memory_space<vmem>>, vector<1x8x256xf32>
    %209 = vector.shape_cast %208 : vector<1x8x256xf32> to vector<8x256xf32>
    %210 = vector.shape_cast %207 : vector<8x256xf32> to vector<1x8x256xf32>
    tpu.vector_store %arg5[%c0_162, %c0_163, %c0_164], %210 {strides = array<i32>} : memref<1x8x256xf32, #tpu.memory_space<vmem>>, vector<1x8x256xf32>,
    return
  }
  func.func @transform_0(%arg0: i32, %arg1: i32) -> (i32, i32, i32, i32) {
    %c0_i32 = arith.constant 0 : i32
    %c0_i32_0 = arith.constant 0 : i32
    %c0_i32_1 = arith.constant 0 : i32
    %c0_i32_2 = arith.constant 0 : i32
    return %arg0, %c0_i32, %c0_i32_0, %c0_i32_1 : i32, i32, i32, i32
  }
  func.func @transform_1(%arg0: i32, %arg1: i32) -> (i32, i32) {
    %c0_i32 = arith.constant 0 : i32
    %c0_i32_0 = arith.constant 0 : i32
    %c0_i32_1 = arith.constant 0 : i32
    return %c0_i32, %c0_i32_0 : i32, i32
  }
  func.func @transform_2(%arg0: i32, %arg1: i32) -> (i32, i32) {
    %c0_i32 = arith.constant 0 : i32
    %c0_i32_0 = arith.constant 0 : i32
    %c0_i32_1 = arith.constant 0 : i32
    return %c0_i32, %c0_i32_0 : i32, i32
  }
  func.func @transform_3(%arg0: i32, %arg1: i32) -> (i32, i32, i32) {
    %c0_i32 = arith.constant 0 : i32
    %c0_i32_0 = arith.constant 0 : i32
    return %arg0, %c0_i32, %arg1 : i32, i32, i32
  }
}

</mosaic_0001>

<bundles_post_ra>
// kernel: tpu_custom_call.1
= control target key start
LH: loop header
LB: loop body
LE: loop exit
PB: predicated region body
PF: predicated region fallthrough
CT: control target
= control target key end

     0   :  { %8 = vsyncpa [#allocation5], 0  ;;  %s1970_s0 = inlined_call_operand.hbm [shape: f32[2,4,16,16], index: 0, kind: input, shape index: {}]   ;;  %s1971_s1 = inlined_call_operand.vmem [shape: f32[8,36], index: 1, kind: input, shape index: {}]   ;;  %s1972_s2 = inlined_call_operand.vmem [shape: f32[8,1], index: 2, kind: input, shape index: {}]   ;;  %s1973_s3 = inlined_call_operand.hbm [shape: f32[2,8,256], index: 3, kind: output, shape index: {}]  }
   0x1   :  { %10 = vsyncpa [#allocation5 + $0x1], 0 }
   0x2   :  { %11 = vsyncpa [#allocation6], 0 }
   0x3   :  { %13 = vsyncpa [#allocation6 + $0x1], 0  ;;  %s1500_s12 = smov 0   ;;  %s1502_s13 = smov 0  }
   0x4   :  { %s1504_s14 = smov 0   ;;  %s1506_s15 = smov 0  }
   0x5   :  { %s1508_s16 = smov 0   ;;  %s1510_s17 = smov 0  }
   0x6 LB: > { %s1165_s18 = sadd.s32 4294967295, %s1456_s17   ;;  %s1166_s19 = sadd.s32 4294967294, %s1456_s17   ;;  %s1456_s17 = sphi %s1510_s17, %s19_s17   ;;  %s1452_s16 = sphi %s1508_s16, %s1998_s16   ;;  %s1448_s15 = sphi %s1506_s15, %s1997_s15   ;;  %s1444_s14 = sphi %s1504_s14, %s1996_s14   ;;  %s1440_s13 = sphi %s1502_s13, %s1995_s13   ;;  %s1436_s12 = sphi %s1500_s12, %s1994_s12  }
   0x7   : > { %s31_s20 = sadd.s32 1, %s1452_s16  ;;  %s38_s21 = sadd.s32 1, %s1444_s14 }
   0x8   : > { %p33_p0 = scmp.ge.s32.totalorder %s31_s20, 2  ;;  %p45_p1 = scmp.ne.s32.totalorder %s1444_s14, %s1440_s13 }
   0x9   : > { %p46_p2 = scmp.eq.s32.totalorder %s1456_s17, 0  ;;  %p51_p3 = scmp.ne.s32.totalorder %s1440_s13, %s1436_s12 }
   0xa   : > { %s2000_s20 = smov (%p33_p0, %s31_s20), 0  ;;  %p52_p5 = scmp.eq.s32.totalorder %s1165_s18, 0 }
   0xb   : > { %p1541_p4 = por %p46_p2, %p45_p1  ;;  %s35_s23 = ssub.s32 %s1452_s16, %s2000_s20 }
   0xc   : > { %p119_p6 = scmp.eq.s32.totalorder %s1165_s18, 1  ;;  %p36_p7 = scmp.eq.s32.totalorder %s35_s23, 0 }
   0xd   : > { %p1547_p8 = por %p52_p5, %p51_p3  ;;  %p125_p10 = scmp.eq.s32.totalorder %s1166_s19, 1 }
   0xe   : > { %p1551_p9 = por %p119_p6, %p45_p1  ;;  %p1269_p13 = scmp.lt.s32.totalorder %s1456_s17, 2 }
   0xf   : > { %s1556_s26 = scalar_select %p36_p7, %s1444_s14, %s38_s21  }
  0x10   : > { %s1977_s25 = scalar_select %p1551_p9, 1, 0 }
  0x11   : > { %p1558_p11 = por %p125_p10, %p51_p3  ;;  %s151_s28 = sand.u32 1, %s1444_s14  }
  0x12   : > { %s1169_s29 = sshll.u32 %s151_s28, 6  ;;  %s1247_s30 = sshll.u32 %s1452_s16, 10 }
  0x13   : > { %s1978_s27 = scalar_select %p1558_p11, 1, 0 }
  0x14   : > { %s1569_s6 = scalar_lea.hbm %s1970_s0, %s1247_s30  ;;  %s155_s7 = scalar_lea.vmem [#allocation4], %s1169_s29 }
  0x15   : > { %s162_s8 = sshll.u32 %s155_s7, 4  ;;  %p1575_p0 = pnand %p1269_p13, %p1541_p4  ;;  %s1571_s8 = int_to_ptr.vmem [resolvable:$true] %s162_s8 }
  0x16   : > { %s1580_s10 = scalar_lea.sflag [#allocation5], %s151_s28  ;;  %s1344_s11 = scalar_lea.hbm %s1569_s6, 1024 }
  0x17   : > { %p1345_p2 = scmp.ne.s32.totalorder %s1569_s6, %s1344_s11  ;;  %p1346_p3 = pneg %p1575_p0 }
  0x18   : > { %s1349_s21 = scalar_lea.hbm %s1970_s0, 2048  ;;  %p1350_p4 = scmp.lt.u32.totalorder %s1569_s6, %s1970_s0 }
  0x19   : > { %p1347_p5 = pnand %p1346_p3, %p1345_p2  ;;  %p1351_p7 = scmp.lt.u32.totalorder %s1349_s21, %s1344_s11 }
  0x1a   : > { %p1353_p13 = scmp.lt.u32.totalorder %s1344_s11, %s1569_s6 }
  0x1b   : > { %p1348_p6 = pneg %p1347_p5  ;;  %p1352_p10 = por %p1351_p7, %p1350_p4 }
  0x1d   : > { %p1354_p12 = por %p1353_p13, %p1352_p10 }
  0x1f   : > { %p1355_p1 = pnand %p1354_p12, %p1348_p6 }
  0x21   : > { %1358 = shalt.err (!%p1355_p1)
}
  0x22   : > { %s1359_s28 = scalar_lea.vmem %s1571_s8, 1024  ;;  %s1458_s29 = smov [#allocation4]  }
  0x23   : > { %p1360_p2 = scmp.ne.s32.totalorder %s1571_s8, %s1359_s28  ;;  %s1364_s30 = sshll.u32 %s1458_s29, 4  ;;  %s1365_s30 = int_to_ptr.vmem [resolvable:$false] %s1364_s30 }
  0x24   : > { %s1366_s4 = scalar_lea.vmem %s1365_s30, 2048  ;;  %p1367_p9 = scmp.lt.s32.totalorder %s1571_s8, %s1365_s30 }
  0x25   : > { %p1362_p5 = pnand %p1360_p2, %p1346_p3  ;;  %p1368_p4 = scmp.lt.s32.totalorder %s1366_s4, %s1359_s28 }
  0x27   : > { %p1363_p11 = pneg %p1362_p5  ;;  %p1369_p7 = por %p1368_p4, %p1367_p9 }
  0x29   : > { %p1370_p10 = pnand %p1369_p7, %p1363_p11 }
  0x2b   : > { %1373 = shalt.err (!%p1370_p10)
}
  0x2c   : > { %s1459_s5 = smov 128   ;;  %s1460_s7 = smov 8  }
  0x2d   : > { %1264 = dma.hbm_to_vmem [thread:$0]  (!%p1575_p0), %s1569_s6, 1024, %s1571_s8, %s1580_s10, %s1459_s5, %s1459_s5, %s1460_s7  }
  0x2e   : > { %p170_p12 = scmp.lt.s32.totalorder %s1456_s17, 3  ;;  %p1980_p1 = scmp.ge.s32.totalorder %s1456_s17, 1 }
  0x30   : > { %p171_p3 = pnand %p1980_p1, %p170_p12 }
  0x31   : > { %s1612_s11 = sand.u32 (!%p171_p3), 1, %s1440_s13  }
  0x32   : > { %174 = sbr.rel (%p171_p3) target bundleno = 626 (0x272), region = 32  ;;  %s1173_s18 = sshll.u32 (!%p171_p3), %s1612_s11, 6 }
  0x33   : > { %s177_s19 = scalar_lea.sflag (!%p171_p3), [#allocation5], %s1612_s11  ;;  %s1616_s21 = scalar_lea.vmem (!%p171_p3), [#allocation4], %s1173_s18 }
  0x39   : > { %1427 = dma.done.wait (%p1547_p8), %s177_s19, 1024  }
  0x3a   : > { %1429 = vsyncadd (%p1547_p8), %s177_s19, 4294966272  ;;  %vm228_vm0 = vcmask 1041409   ;;  %v1461_v0 = vmov 0.0   ;;  %vm230_vm1 = vcmask 1045509   ;;  %vm233_vm2 = vcmask 1042434   ;;  %s1462_s24 = smov 1  }
  0x3b   : > { %v227_v1 = vrot.slane %v1461_v0, 7  ;;  %v232_v2 = vrot.slane %v1461_v0, 6  ;;  %1038 = vmatprep.mubr.f32.mxu0 %v1461_v0  ;;  %vm235_vm3 = vcmask 1046534   ;;  %v237_v4 = vrot.slane %v1461_v0, 5  ;;  %v1175_v9 = vld [vmem:[%s1616_s21 + $0x1] sm:$0x1] }
  0x3c   : > { %vm238_vm4 = vcmask 1043459   ;;  %vm240_vm5 = vcmask 1047559   ;;  %v1176_v10 = vld [vmem:[%s1616_s21 + $0x11] sm:$0x1]  ;;  %v1177_v11 = vld [vmem:[%s1616_s21 + $0x21] sm:$0x1] }
  0x3d   : > { %v229_v3 = vsel %vm228_vm0, %v227_v1, 0.0  ;;  %v1178_v13 = vld [vmem:[%s1616_s21 + $0x31] sm:$0x1]  ;;  %v288_v14 = vrot.slane %v1176_v10, 7  ;;  %v291_v15 = vrot.slane %v1177_v11, 6  ;;  %s1463_s6 = smov 33  }
  0x3e   : > { %v231_v5 = vsel %vm230_vm1, %v227_v1, %v229_v3  ;;  %v252_v16 = vld [vmem:[%s1616_s21] sm:$0x1]  ;;  %v294_v17 = vrot.slane %v1178_v13, 5  ;;  %v253_v18 = vld [vmem:[%s1616_s21 + $0x10] sm:$0x1]  ;;  %s1464_s8 = smov 17  }
  0x3f   : > { %v234_v6 = vsel %vm233_vm2, %v232_v2, %v231_v5  ;;  %v254_v19 = vld [vmem:[%s1616_s21 + $0x20] sm:$0x1]  ;;  %v289_v20 = vsel %vm228_vm0, %v288_v14, %v1175_v9  ;;  %v255_v21 = vld [vmem:[%s1616_s21 + $0x30] sm:$0x1]  ;;  %v260_v22 = vrot.slane %v253_v18, 7  ;;  %s1465_s9 = smov 49  }
  0x40   : > { %v236_v7 = vsel %vm235_vm3, %v232_v2, %v234_v6  ;;  %v263_v23 = vrot.slane %v254_v19, 6  ;;  %v1179_v24 = vld [vmem:[%s1616_s21 + $0x2] sm:$0x1]  ;;  %v290_v25 = vsel %vm230_vm1, %v288_v14, %v289_v20  ;;  %v266_v26 = vrot.slane %v255_v21, 5  ;;  %v1180_v27 = vld [vmem:[%s1616_s21 + $0x12] sm:$0x1] }
  0x41   : > { %v239_v8 = vsel %vm238_vm4, %v237_v4, %v236_v7  ;;  %v1181_v28 = vld [vmem:[%s1616_s21 + $0x22] sm:$0x1]  ;;  %v292_v29 = vsel %vm233_vm2, %v291_v15, %v290_v25  ;;  %v261_v30 = vsel %vm228_vm0, %v260_v22, %v252_v16  ;;  %v1182_v31 = vld [vmem:[%s1616_s21 + $0x32] sm:$0x1]  ;;  %v316_v32 = vrot.slane %v1180_v27, 7  ;;  %s1466_s10 = smov 65  }
  0x42   : > { %v1635_v12 = vsel %vm240_vm5, %v237_v4, %v239_v8  ;;  %v319_v33 = vrot.slane %v1181_v28, 6  ;;  %v1183_v34 = vld [vmem:[%s1616_s21 + $0x3] sm:$0x1]  ;;  %v293_v35 = vsel %vm235_vm3, %v291_v15, %v292_v29  ;;  %v262_v36 = vsel %vm230_vm1, %v260_v22, %v261_v30  ;;  %v1184_v38 = vld [vmem:[%s1616_s21 + $0x13] sm:$0x1]  ;;  %s1467_s22 = smov 113  }
  0x43   : > { %242 = vrot.lane.b32.xlu0 %v1635_v12, %s1462_s24  ;;  %v322_v37 = vrot.slane %v1182_v31, 5  ;;  %v1185_v39 = vld [vmem:[%s1616_s21 + $0x23] sm:$0x1]  ;;  %v295_v40 = vsel %vm238_vm4, %v294_v17, %v293_v35  ;;  %v264_v41 = vsel %vm233_vm2, %v263_v23, %v262_v36  ;;  %v317_v42 = vsel %vm228_vm0, %v316_v32, %v1179_v24  ;;  %v1186_v43 = vld [vmem:[%s1616_s21 + $0x33] sm:$0x1]  ;;  %s1468_s23 = smov 81  }
  0x44   : > { %v344_v44 = vrot.slane %v1184_v38, 7  ;;  %v296_v45 = vsel %vm240_vm5, %v294_v17, %v295_v40  ;;  %v265_v46 = vsel %vm235_vm3, %v263_v23, %v264_v41  ;;  %v318_v47 = vsel %vm230_vm1, %v316_v32, %v317_v42  ;;  %v1196_v49 = vld [vmem:[%s1616_s21 + $0x16] sm:$0x1]  ;;  %v1197_v50 = vld [vmem:[%s1616_s21 + $0x26] sm:$0x1]  ;;  %s1469_s28 = smov 97  }
  0x45   : > { %v347_v48 = vrot.slane %v1185_v39, 6  ;;  %297 = vrot.lane.b32.xlu1 %v296_v45, %s1463_s6  ;;  %v267_v51 = vsel %vm238_vm4, %v266_v26, %v265_v46  ;;  %v320_v52 = vsel %vm233_vm2, %v319_v33, %v318_v47  ;;  %v350_v54 = vrot.slane %v1186_v43, 5  ;;  %v1195_v55 = vld [vmem:[%s1616_s21 + $0x6] sm:$0x1]  ;;  %v1198_v56 = vld [vmem:[%s1616_s21 + $0x36] sm:$0x1] }
  0x46   : > { %v345_v53 = vsel %vm228_vm0, %v344_v44, %v1183_v34  ;;  %v268_v57 = vsel %vm240_vm5, %v266_v26, %v267_v51  ;;  %v321_v58 = vsel %vm235_vm3, %v319_v33, %v320_v52  ;;  %v428_v60 = vrot.slane %v1196_v49, 7  ;;  %v1188_v61 = vld [vmem:[%s1616_s21 + $0x14] sm:$0x1]  ;;  %v1189_v62 = vld [vmem:[%s1616_s21 + $0x24] sm:$0x1]  ;;  %s1470_s29 = smov 112  }
  0x47   : > { %v346_v59 = vsel %vm230_vm1, %v344_v44, %v345_v53  ;;  %269 = vrot.lane.b32.xlu0 %v268_v57, %s1464_s8  ;;  %v323_v63 = vsel %vm238_vm4, %v322_v37, %v321_v58  ;;  %v431_v2 = vrot.slane %v1197_v50, 6  ;;  %v434_v3 = vrot.slane %v1198_v56, 5  ;;  %v1187_v4 = vld [vmem:[%s1616_s21 + $0x4] sm:$0x1]  ;;  %v1190_v5 = vld [vmem:[%s1616_s21 + $0x34] sm:$0x1] }
  0x48   : > { %v348_v1 = vsel %vm233_vm2, %v347_v48, %v346_v59  ;;  %v324_v6 = vsel %vm240_vm5, %v322_v37, %v323_v63  ;;  %v429_v8 = vsel %vm228_vm0, %v428_v60, %v1195_v55  ;;  %v372_v9 = vrot.slane %v1188_v61, 7  ;;  %v1192_v10 = vld [vmem:[%s1616_s21 + $0x15] sm:$0x1]  ;;  %v1193_v11 = vld [vmem:[%s1616_s21 + $0x25] sm:$0x1]  ;;  %s1471_s30 = smov 127  }
  0x49   : > { %v349_v7 = vsel %vm235_vm3, %v347_v48, %v348_v1  ;;  %325 = vrot.lane.b32.xlu1 %v324_v6, %s1465_s9  ;;  %v430_v14 = vsel %vm230_vm1, %v428_v60, %v429_v8  ;;  %v375_v15 = vrot.slane %v1189_v62, 6  ;;  %v378_v16 = vrot.slane %v1190_v5, 5  ;;  %v1191_v17 = vld [vmem:[%s1616_s21 + $0x5] sm:$0x1]  ;;  %v1194_v18 = vld [vmem:[%s1616_s21 + $0x35] sm:$0x1] }
  0x4a   : > { %v351_v13 = vsel %vm238_vm4, %v350_v54, %v349_v7  ;;  %v432_v20 = vsel %vm233_vm2, %v431_v2, %v430_v14  ;;  %v373_v21 = vsel %vm228_vm0, %v372_v9, %v1187_v4  ;;  %v400_v22 = vrot.slane %v1192_v10, 7  ;;  %v1200_v23 = vld [vmem:[%s1616_s21 + $0x17] sm:$0x1]  ;;  %v1201_v24 = vld [vmem:[%s1616_s21 + $0x27] sm:$0x1]  ;;  %s1472_s4 = smov 96  }
  0x4b   : > { %v352_v19 = vsel %vm240_vm5, %v350_v54, %v351_v13  ;;  %v433_v25 = vsel %vm235_vm3, %v431_v2, %v432_v20  ;;  %v374_v26 = vsel %vm230_vm1, %v372_v9, %v373_v21  ;;  %v403_v27 = vrot.slane %v1193_v11, 6  ;;  %v1199_v29 = vld [vmem:[%s1616_s21 + $0x7] sm:$0x1]  ;;  %v1202_v30 = vld [vmem:[%s1616_s21 + $0x37] sm:$0x1]  ;;  %s1473_s5 = smov 126  }
  0x4c   : > { %353 = vrot.lane.b32.xlu0 %v352_v19, %s1466_s10  ;;  %v406_v28 = vrot.slane %v1194_v18, 5  ;;  %v435_v31 = vsel %vm238_vm4, %v434_v3, %v433_v25  ;;  %v376_v32 = vsel %vm233_vm2, %v375_v15, %v374_v26  ;;  %v401_v33 = vsel %vm228_vm0, %v400_v22, %v1191_v17  ;;  %v1204_v35 = vld [vmem:[%s1616_s21 + $0x18] sm:$0x1]  ;;  %v1205_v40 = vld [vmem:[%s1616_s21 + $0x28] sm:$0x1]  ;;  %s1474_s7 = smov 110  }
  0x4d   : > { %v461_v34 = vrot.slane %v1200_v23, 7  ;;  %v436_v36 = vsel %vm240_vm5, %v434_v3, %v435_v31  ;;  %v377_v37 = vsel %vm235_vm3, %v375_v15, %v376_v32  ;;  %v402_v38 = vsel %vm230_vm1, %v400_v22, %v401_v33  ;;  %v1206_v41 = vld [vmem:[%s1616_s21 + $0x38] sm:$0x1]  ;;  %v1203_v46 = vld [vmem:[%s1616_s21 + $0x8] sm:$0x1]  ;;  %s1475_s18 = smov 95  }
  0x4e   : > { %v464_v39 = vrot.slane %v1201_v24, 6  ;;  %437 = vrot.lane.b32.xlu1 %v436_v36, %s1467_s22  ;;  %v379_v42 = vsel %vm238_vm4, %v378_v16, %v377_v37  ;;  %v404_v43 = vsel %vm233_vm2, %v403_v27, %v402_v38  ;;  %v467_v45 = vrot.slane %v1202_v30, 5  ;;  %v1208_v47 = vld [vmem:[%s1616_s21 + $0x19] sm:$0x1]  ;;  %v1209_v52 = vld [vmem:[%s1616_s21 + $0x29] sm:$0x1] }
  0x4f   : > { %v462_v44 = vsel %vm228_vm0, %v461_v34, %v1199_v29  ;;  %v380_v48 = vsel %vm240_vm5, %v378_v16, %v379_v42  ;;  %v405_v49 = vsel %vm235_vm3, %v403_v27, %v404_v43  ;;  %v488_v51 = vrot.slane %v1204_v35, 7  ;;  %v1210_v53 = vld [vmem:[%s1616_s21 + $0x39] sm:$0x1]  ;;  %v1207_v58 = vld [vmem:[%s1616_s21 + $0x9] sm:$0x1]  ;;  %s1476_s19 = smov 111  }
  0x50   : > { %v463_v50 = vsel %vm230_vm1, %v461_v34, %v462_v44  ;;  %381 = vrot.lane.b32.xlu0 %v380_v48, %s1468_s23  ;;  %v407_v54 = vsel %vm238_vm4, %v406_v28, %v405_v49  ;;  %v491_v56 = vrot.slane %v1205_v40, 6  ;;  %v494_v57 = vrot.slane %v1206_v41, 5  ;;  %v1212_v59 = vld [vmem:[%s1616_s21 + $0x1a] sm:$0x1]  ;;  %v1213_v1 = vld [vmem:[%s1616_s21 + $0x2a] sm:$0x1] }
  0x51   : > { %v465_v55 = vsel %vm233_vm2, %v464_v39, %v463_v50  ;;  %v408_v60 = vsel %vm240_vm5, %v406_v28, %v407_v54  ;;  %v489_v62 = vsel %vm228_vm0, %v488_v51, %v1203_v46  ;;  %v515_v63 = vrot.slane %v1208_v47, 7  ;;  %v1214_v2 = vld [vmem:[%s1616_s21 + $0x3a] sm:$0x1]  ;;  %v1211_v7 = vld [vmem:[%s1616_s21 + $0xa] sm:$0x1]  ;;  %p1991_p9 = scmp.ne.s32.totalorder %s1977_s25, 0 }
  0x52   : > { %v466_v61 = vsel %vm235_vm3, %v464_v39, %v465_v55  ;;  %409 = vrot.lane.b32.xlu1 %v408_v60, %s1469_s28  ;;  %v490_v4 = vsel %vm230_vm1, %v488_v51, %v489_v62  ;;  %v518_v5 = vrot.slane %v1209_v52, 6  ;;  %v521_v6 = vrot.slane %v1210_v53, 5  ;;  %v1216_v8 = vld [vmem:[%s1616_s21 + $0x1b] sm:$0x1]  ;;  %v1217_v14 = vld [vmem:[%s1616_s21 + $0x2b] sm:$0x1] }
  0x53   : > { %v468_v3 = vsel %vm238_vm4, %v467_v45, %v466_v61  ;;  %v492_v10 = vsel %vm233_vm2, %v491_v56, %v490_v4  ;;  %v516_v11 = vsel %vm228_vm0, %v515_v63, %v1207_v58  ;;  %v542_v13 = vrot.slane %v1212_v59, 7  ;;  %v1215_v19 = vld [vmem:[%s1616_s21 + $0xb] sm:$0x1]  ;;  %v1218_v20 = vld [vmem:[%s1616_s21 + $0x3b] sm:$0x1] }
  0x54   : > { %v469_v9 = vsel %vm240_vm5, %v467_v45, %v468_v3  ;;  %v493_v15 = vsel %vm235_vm3, %v491_v56, %v492_v10  ;;  %v517_v16 = vsel %vm230_vm1, %v515_v63, %v516_v11  ;;  %v545_v17 = vrot.slane %v1213_v1, 6  ;;  %v1228_v25 = vld [vmem:[%s1616_s21 + $0x1e] sm:$0x1]  ;;  %v1229_v30 = vld [vmem:[%s1616_s21 + $0x2e] sm:$0x1] }
  0x55   : > { %470 = vrot.lane.b32.xlu0 %v469_v9, %s1462_s24  ;;  %v548_v18 = vrot.slane %v1214_v2, 5  ;;  %v495_v21 = vsel %vm238_vm4, %v494_v57, %v493_v15  ;;  %v519_v22 = vsel %vm233_vm2, %v518_v5, %v517_v16  ;;  %v543_v23 = vsel %vm228_vm0, %v542_v13, %v1211_v7  ;;  %v1230_v31 = vld [vmem:[%s1616_s21 + $0x3e] sm:$0x1]  ;;  %v1227_v36 = vld [vmem:[%s1616_s21 + $0xe] sm:$0x1] }
  0x56   : > { %v569_v24 = vrot.slane %v1216_v8, 7  ;;  %v496_v26 = vsel %vm240_vm5, %v494_v57, %v495_v21  ;;  %v520_v27 = vsel %vm235_vm3, %v518_v5, %v519_v22  ;;  %v544_v28 = vsel %vm230_vm1, %v542_v13, %v543_v23  ;;  %v1220_v37 = vld [vmem:[%s1616_s21 + $0x1c] sm:$0x1]  ;;  %v1221_v42 = vld [vmem:[%s1616_s21 + $0x2c] sm:$0x1] }
  0x57   : > { %v572_v29 = vrot.slane %v1217_v14, 6  ;;  %497 = vrot.lane.b32.xlu1 %v496_v26, %s1464_s8  ;;  %v522_v32 = vsel %vm238_vm4, %v521_v6, %v520_v27  ;;  %v546_v33 = vsel %vm233_vm2, %v545_v17, %v544_v28  ;;  %v575_v35 = vrot.slane %v1218_v20, 5  ;;  %v1222_v43 = vld [vmem:[%s1616_s21 + $0x3c] sm:$0x1]  ;;  %v1219_v48 = vld [vmem:[%s1616_s21 + $0xc] sm:$0x1] }
  0x58   : > { %v570_v34 = vsel %vm228_vm0, %v569_v24, %v1215_v19  ;;  %v523_v38 = vsel %vm240_vm5, %v521_v6, %v522_v32  ;;  %v547_v39 = vsel %vm235_vm3, %v545_v17, %v546_v33  ;;  %v650_v41 = vrot.slane %v1228_v25, 7  ;;  %v1224_v49 = vld [vmem:[%s1616_s21 + $0x1d] sm:$0x1]  ;;  %v1225_v54 = vld [vmem:[%s1616_s21 + $0x2d] sm:$0x1] }
  0x59   : > { %v571_v40 = vsel %vm230_vm1, %v569_v24, %v570_v34  ;;  %524 = vrot.lane.b32.xlu0 %v523_v38, %s1463_s6  ;;  %v549_v44 = vsel %vm238_vm4, %v548_v18, %v547_v39  ;;  %v653_v46 = vrot.slane %v1229_v30, 6  ;;  %v656_v47 = vrot.slane %v1230_v31, 5  ;;  %v1226_v55 = vld [vmem:[%s1616_s21 + $0x3d] sm:$0x1]  ;;  %v1223_v60 = vld [vmem:[%s1616_s21 + $0xd] sm:$0x1] }
  0x5a   : > { %v573_v45 = vsel %vm233_vm2, %v572_v29, %v571_v40  ;;  %v550_v50 = vsel %vm240_vm5, %v548_v18, %v549_v44  ;;  %v651_v52 = vsel %vm228_vm0, %v650_v41, %v1227_v36  ;;  %v596_v53 = vrot.slane %v1220_v37, 7  ;;  %v1232_v61 = vld [vmem:[%s1616_s21 + $0x1f] sm:$0x1]  ;;  %v1233_v3 = vld [vmem:[%s1616_s21 + $0x2f] sm:$0x1] }
  0x5b   : > { %v574_v51 = vsel %vm235_vm3, %v572_v29, %v573_v45  ;;  %551 = vrot.lane.b32.xlu1 %v550_v50, %s1465_s9  ;;  %v652_v57 = vsel %vm230_vm1, %v650_v41, %v651_v52  ;;  %v599_v58 = vrot.slane %v1221_v42, 6  ;;  %v602_v59 = vrot.slane %v1222_v43, 5  ;;  %v1231_v8 = vld [vmem:[%s1616_s21 + $0xf] sm:$0x1]  ;;  %v1234_v9 = vld [vmem:[%s1616_s21 + $0x3f] sm:$0x1] }
  0x5c   : > { %v576_v56 = vsel %vm238_vm4, %v575_v35, %v574_v51  ;;  %v654_v63 = vsel %vm233_vm2, %v653_v46, %v652_v57  ;;  %v597_v1 = vsel %vm228_vm0, %v596_v53, %v1219_v48  ;;  %v623_v2 = vrot.slane %v1224_v49, 7  ;;  %s1477_s21 = smov 94  }
  0x5d   : > { %v577_v62 = vsel %vm240_vm5, %v575_v35, %v576_v56  ;;  %v655_v4 = vsel %vm235_vm3, %v653_v46, %v654_v63  ;;  %v598_v5 = vsel %vm230_vm1, %v596_v53, %v597_v1  ;;  %v626_v6 = vrot.slane %v1225_v54, 6 }
  0x5e   : > { %578 = vrot.lane.b32.xlu0 %v577_v62, %s1466_s10  ;;  %v629_v7 = vrot.slane %v1226_v55, 5  ;;  %v657_v10 = vsel %vm238_vm4, %v656_v47, %v655_v4  ;;  %v600_v11 = vsel %vm233_vm2, %v599_v58, %v598_v5  ;;  %v624_v13 = vsel %vm228_vm0, %v623_v2, %v1223_v60  ;;  %s1174_s10 = sshll.u32 %s1612_s11, 4 }
  0x5f   : > { %v679_v14 = vrot.slane %v1232_v61, 7  ;;  %v658_v15 = vsel %vm240_vm5, %v656_v47, %v657_v10  ;;  %v601_v16 = vsel %vm235_vm3, %v599_v58, %v600_v11  ;;  %v625_v17 = vsel %vm230_vm1, %v623_v2, %v624_v13  ;;  %v957_v11 = vld [vmem:[%s1972_s2] sm:$0xff] }
  0x60   : > { %v682_v18 = vrot.slane %v1233_v3, 6  ;;  %659 = vrot.lane.b32.xlu1 %v658_v15, %s1467_s22  ;;  %v603_v19 = vsel %vm238_vm4, %v602_v59, %v601_v16  ;;  %v627_v20 = vsel %vm233_vm2, %v626_v6, %v625_v17  ;;  %v685_v22 = vrot.slane %v1234_v9, 5  ;;  %s1248_s22 = sshll.u32 %s1448_s15, 8  ;;  %s1479_s15 = smov [#allocation7]  }
  0x61   : > { %v680_v21 = vsel %vm228_vm0, %v679_v14, %v1231_v8  ;;  %v604_v23 = vsel %vm240_vm5, %v602_v59, %v603_v19  ;;  %v628_v24 = vsel %vm235_vm3, %v626_v6, %v627_v20  ;;  %vm245_vm6 = vcmask 134152  }
  0x62   : > { %v681_v25 = vsel %vm230_vm1, %v679_v14, %v680_v21  ;;  %605 = vrot.lane.b32.xlu0 %v604_v23, %s1468_s23  ;;  %v630_v26 = vsel %vm238_vm4, %v629_v7, %v628_v24  ;;  %vm272_vm7 = vcmask 265352   ;;  %vm300_vm8 = vcmask 396552   ;;  %s202_s23 = scalar_lea.vmem [#allocation7], %s1174_s10 }
  0x63   : > { %v683_v27 = vsel %vm233_vm2, %v682_v18, %v681_v25  ;;  %v631_v28 = vsel %vm240_vm5, %v629_v7, %v630_v26  ;;  %vm328_vm9 = vcmask 527752   ;;  %vm356_vm10 = vcmask 658952  }
  0x64   : > { %v684_v29 = vsel %vm235_vm3, %v682_v18, %v683_v27  ;;  %632 = vrot.lane.b32.xlu1 %v631_v28, %s1469_s28  ;;  %vm384_vm11 = vcmask 790152   ;;  %vm443_vm12 = vcmask 1044360   ;;  %vm444_vm13 = vcmask 7172   ;;  %s1066_s28 = sshll.u32 %s202_s23, 4  ;;  %s1923_s28 = int_to_ptr.vmem [resolvable:$true] %s1066_s28 }
  0x65   : > { %v686_v30 = vsel %vm238_vm4, %v685_v22, %v684_v29  ;;  %vm440_vm14 = vcmask 924672   ;;  %vm412_vm15 = vcmask 921352   ;;  %vm1820_vm0 = vmor %vm444_vm13, %vm443_vm12  ;;  %vm727_vm1 = vcmask 3072  }
  0x66   : > { %v687_v31 = vsel %vm240_vm5, %v685_v22, %v686_v30  ;;  %v731_v47 = vlaneseq  ;;  %vm729_vm2 = vcmask 273672   ;;  %v1478_v10 = vmov 0  }
  0x67   : > { %688 = vrot.lane.b32.xlu0 %v687_v31, %s1462_s24  ;;  %vm828_vm5 = vcmask 916480   ;;  %vm919_vm13 = vcmask 777216  }
  0x68   : > { %723 = vrot.lane.b32.xlu1 %v1635_v12, %s1464_s8  ;;  %v1834_v50 = vand.u32 127, %v731_v47  ;;  %1339 = vset.pattern.permute.xlu0 %v1478_v10 }
  0x6a   : > { %v1840_v54 = vadd.s32 128, %v1834_v50  ;;  %v738_v56 = vand.u32 15, %v1834_v50 }
  0x6c   : > { %v745_v58 = vand.u32 15, %v1840_v54  ;;  %vm1851_vm3 = vcmp.ge.s32.totalorder %v738_v56, 1 }
  0x6e   : > { %vm1857_vm4 = vcmp.ge.s32.totalorder %v745_v58, 1  ;;  %vm1890_vm12 = vcmp.le.s32.totalorder %v745_v58, 14 }
  0xb5   : > { %v243_v32 = vpop.permute.xlu0 %242 }
  0xb6   : > { %246 = vst.msk [vmem:[#allocation2] sm:$0xf] %vm245_vm6, %v243_v32 }
  0xb7   : > { %v298_v33 = vpop.permute.xlu1 %297 }
  0xb9   : > { %v270_v34 = vpop.permute.xlu0 %269 }
  0xba   : > { %273 = vst.msk [vmem:[#allocation2] sm:$0xf] %vm272_vm7, %v270_v34 }
  0xbb   : > { %v326_v35 = vpop.permute.xlu1 %325  ;;  %301 = vst.msk [vmem:[#allocation2] sm:$0xf] %vm300_vm8, %v298_v33 }
  0xbc   : > { %329 = vst.msk [vmem:[#allocation2] sm:$0xf] %vm328_vm9, %v326_v35 }
  0xbe   : > { %v354_v36 = vpop.permute.xlu0 %353 }
  0xbf   : > { %357 = vst.msk [vmem:[#allocation2] sm:$0xf] %vm356_vm10, %v354_v36 }
  0xc0   : > { %v438_v12 = vpop.permute.xlu1 %437 }
  0xc1   : > { %v439_v37 = vrot.slane %v438_v12, 4 }
  0xc2   : > { %v382_v38 = vpop.permute.xlu0 %381 }
  0xc3   : > { %385 = vst.msk [vmem:[#allocation2] sm:$0xf] %vm384_vm11, %v382_v38  ;;  %v441_v41 = vsel %vm440_vm14, %v439_v37, %v438_v12 }
  0xc4   : > { %v410_v40 = vpop.permute.xlu1 %409 }
  0xc5   : > { %413 = vst.msk [vmem:[#allocation2] sm:$0xf] %vm412_vm15, %v410_v40 }
  0xc6   : > { %446 = vst.msk [vmem:[#allocation2] sm:$0xff] %vm1820_vm0, %v441_v41 }
  0xc7   : > { %v471_v42 = vpop.permute.xlu0 %470  ;;  %728 = vst.msk [vmem:[#allocation2] sm:$0xf] %vm727_vm1, %v1461_v0 }
  0xc8   : > { %473 = vst.msk [vmem:[#allocation2 + $0x4] sm:$0xf] %vm245_vm6, %v471_v42 }
  0xc9   : > { %v498_v43 = vpop.permute.xlu1 %497 }
  0xca   : > { %500 = vst.msk [vmem:[#allocation2 + $0x4] sm:$0xf] %vm272_vm7, %v498_v43 }
  0xcb   : > { %v525_v44 = vpop.permute.xlu0 %524 }
  0xcc   : > { %527 = vst.msk [vmem:[#allocation2 + $0x4] sm:$0xf] %vm300_vm8, %v525_v44  ;;  %vm808_vm8 = vcmask 1031168  }
  0xcd   : > { %v552_v45 = vpop.permute.xlu1 %551 }
  0xce   : > { %554 = vst.msk [vmem:[#allocation2 + $0x4] sm:$0xf] %vm328_vm9, %v552_v45  ;;  %vm854_vm9 = vcmask 908288  }
  0xd0   : > { %v579_v46 = vpop.permute.xlu0 %578 }
  0xd1   : > { %581 = vst.msk [vmem:[#allocation2 + $0x4] sm:$0xf] %vm356_vm10, %v579_v46  ;;  %vm1880_vm10 = vcmp.le.s32.totalorder %v738_v56, 14 }
  0xd2   : > { %v660_v48 = vpop.permute.xlu1 %659 }
  0xd3   : > { %v661_v49 = vrot.slane %v660_v48, 4 }
  0xd4   : > { %v606_v51 = vpop.permute.xlu0 %605 }
  0xd5   : > { %608 = vst.msk [vmem:[#allocation2 + $0x4] sm:$0xf] %vm384_vm11, %v606_v51  ;;  %v662_v53 = vsel %vm440_vm14, %v661_v49, %v660_v48  ;;  %vm872_vm11 = vcmask 900096   ;;  %vm937_vm14 = vcmask 769024  }
  0xd6   : > { %v633_v52 = vpop.permute.xlu1 %632 }
  0xd7   : > { %635 = vst.msk [vmem:[#allocation2 + $0x4] sm:$0xf] %vm412_vm15, %v633_v52  ;;  %vm967_vm15 = vcmask 1043456  }
  0xd8   : > { %664 = vst.msk [vmem:[#allocation2 + $0x4] sm:$0xff] %vm1820_vm0, %v662_v53  ;;  %vm963_vm0 = vcmask 293888  }
  0xd9   : > { %v689_v55 = vpop.permute.xlu0 %688 }
  0xda   : > { %691 = vst.msk [vmem:[#allocation2 + $0x8] sm:$0xf] %vm245_vm6, %v689_v55  ;;  %v724_v57 = vpop.permute.xlu1 %723  ;;  %vm786_vm6 = vcmask 1039360  }
  0xdb   : > { %726 = vst.msk [vmem:[#allocation2 + $0x8] sm:$0xf] %vm272_vm7, %v724_v57  ;;  %vm898_vm7 = vcmask 785408  }
  0xdc   : > { %730 = vst.msk [vmem:[#allocation2 + $0x8] sm:$0xf] %vm729_vm2, %v1461_v0 }
  0xdf   : > { %v817_v60 = vld [vmem:[#allocation2] sm:$0xff] }
  0xe0   : > { %822 = vrot.lane.b32.xlu0 %v817_v60, %s1470_s29  ;;  %v821_v62 = vcombine.high %v817_v60, %v817_v60  ;;  %782 = vrot.lane.b32.xlu1 %v817_v60, %s1471_s30  ;;  %v770_v0 = vsel %vm1851_vm3, %v817_v60, 0.0  ;;  %v778_v1 = vcombine.low %v817_v60, %v817_v60 }
  0xe1   : > { %772 = vst [vmem:[#allocation3] sm:$0xf] %v770_v0 }
  0xe2   : > { %v771_v63 = vsel %vm1857_vm4, %v821_v62, 0.0 }
  0xe3   : > { %773 = vst [vmem:[#allocation3 + $0x8] sm:$0xf] %v771_v63  ;;  %v794_v2 = vld [vmem:[#allocation2 + $0x8] sm:$0xf] }
  0xe4   : > { %892 = vrot.lane.b32.xlu0 %v817_v60, %s1472_s4  ;;  %802 = vrot.lane.b32.xlu1 %v817_v60, %s1473_s5  ;;  %v818_v3 = vld [vmem:[#allocation2 + $0x8] sm:$0xf] }
  0xe5   : > { %v862_v4 = vld [vmem:[#allocation2 + $0x8] sm:$0xf] }
  0xe6   : > { %v1342_v5 = vld [vmem:[#allocation2 + $0x8] ss:$0 sps:$4 sm:$0xff]  }
  0xe7   : > { %v888_v6 = vld [vmem:[#allocation2 + $0x8] sm:$0xf] }
  0xe8   : > { %824 = vrot.lane.b32.xlu0 %v821_v62, %s1470_s29  ;;  %866 = vrot.lane.b32.xlu1 %v817_v60, %s1474_s7  ;;  %v1343_v7 = vld [vmem:[#allocation2 + $0x8] ss:$0 sps:$4 sm:$0xff]  }
  0xe9   : > { %v844_v8 = vld [vmem:[#allocation2 + $0x8] sm:$0xf] }
  0xea   : > { %v927_v9 = vld [vmem:[#allocation2 + $0x8] sm:$0xf] }
  0xec   : > { %915 = vrot.lane.b32.xlu1 %v817_v60, %s1475_s18  ;;  %780 = vrot.lane.b32.xlu0 %v778_v1, %s1471_s30 }
  0xf0   : > { %848 = vrot.lane.b32.xlu1 %v817_v60, %s1476_s19  ;;  %894 = vrot.lane.b32.xlu0 %v821_v62, %s1472_s4 }
  0xf4   : > { %804 = vrot.lane.b32.xlu1 %v821_v62, %s1473_s5  ;;  %850 = vrot.lane.b32.xlu0 %v821_v62, %s1476_s19 }
  0xf8   : > { %868 = vrot.lane.b32.xlu1 %v821_v62, %s1474_s7  ;;  %806 = vrot.lane.b32.xlu0 %v794_v2, %s1473_s5  ;;  %s1050_s5 = scalar_lea.sflag [#allocation6], %s1612_s11 }
  0xfc   : > { %826 = vrot.lane.b32.xlu1 %v818_v3, %s1470_s29  ;;  %870 = vrot.lane.b32.xlu0 %v862_v4, %s1474_s7  ;;  %s1374_s7 = scalar_lea.vmem %s1923_s28, 256 }
  0xfd   : > { %p1375_p8 = scmp.ne.s32.totalorder %s1923_s28, %s1374_s7 }
  0xff   : > { %p1376_p11 = pnand %p1375_p8, %p1991_p9 }
 0x100   : > { %896 = vrot.lane.b32.xlu1 %v888_v6, %s1472_s4  ;;  %784 = vrot.lane.b32.xlu0 %v1342_v5, %s1471_s30  ;;  %s1921_s4 = scalar_lea.hbm %s1973_s3, %s1248_s22 }
 0x101   : > { %p1377_p0 = pneg %p1376_p11 }
 0x104   : > { %852 = vrot.lane.b32.xlu1 %v844_v8, %s1476_s19  ;;  %917 = vrot.lane.b32.xlu0 %v1343_v7, %s1475_s18 }
 0x108   : > { %933 = vrot.lane.b32.xlu1 %v821_v62, %s1477_s21  ;;  %913 = vrot.lane.b32.xlu0 %v778_v1, %s1475_s18  ;;  %s1378_s18 = sshll.u32 %s1479_s15, 4  ;;  %s1379_s18 = int_to_ptr.vmem [resolvable:$false] %s1378_s18 }
 0x109   : > { %s1380_s19 = scalar_lea.vmem %s1379_s18, 512  ;;  %p1381_p6 = scmp.lt.s32.totalorder %s1923_s28, %s1379_s18 }
 0x10a   : > { %p1382_p13 = scmp.lt.s32.totalorder %s1380_s19, %s1374_s7 }
 0x10c   : > { %931 = vrot.lane.b32.xlu1 %v817_v60, %s1477_s21  ;;  %935 = vrot.lane.b32.xlu0 %v927_v9, %s1477_s21  ;;  %p1383_p2 = por %p1382_p13, %p1381_p6 }
 0x10e   : > { %p1384_p5 = pnand %p1383_p2, %p1377_p0 }
 0x110   : > { %960 = vperm.xlu0 %1339, %v957_v11  }
 0x152   : > { %v823_v13 = vpop.permute.xlu0 %822  ;;  %v783_v14 = vpop.permute.xlu1 %782 }
 0x156   : > { %v893_v15 = vpop.permute.xlu0 %892  ;;  %v803_v16 = vpop.permute.xlu1 %802 }
 0x15a   : > { %v825_v17 = vpop.permute.xlu0 %824  ;;  %v867_v18 = vpop.permute.xlu1 %866 }
 0x15b   : > { %v829_v19 = vsel %vm828_vm5, %v823_v13, %v825_v17 }
 0x15c   : > { %v833_v20 = vsel %vm1851_vm3, %v829_v19, 0.0  ;;  %v946_v19 = vld [vmem:[%s1971_s1] sm:$0xff] }
 0x15d   : > { %v837_v21 = vrot.slane %v833_v20, 4 }
 0x15e   : > { %v916_v22 = vpop.permute.xlu1 %915  ;;  %v781_v23 = vpop.permute.xlu0 %780 }
 0x15f   : > { %841 = vst [vmem:[#allocation3 + $0x10] sm:$0xf0] %v837_v21  ;;  %v787_v24 = vsel %vm786_vm6, %v781_v23, %v783_v14 }
 0x160   : > { %791 = vst [vmem:[#allocation3] sm:$0xf0] %v787_v24 }
 0x162   : > { %v849_v25 = vpop.permute.xlu1 %848  ;;  %v895_v26 = vpop.permute.xlu0 %894 }
 0x163   : > { %v899_v27 = vsel %vm898_vm7, %v893_v15, %v895_v26 }
 0x164   : > { %v903_v28 = vsel %vm1851_vm3, %v899_v27, 0.0 }
 0x165   : > { %905 = vst [vmem:[#allocation3 + $0x30] sm:$0xf] %v903_v28 }
 0x166   : > { %v805_v30 = vpop.permute.xlu1 %804  ;;  %v851_v31 = vpop.permute.xlu0 %850 }
 0x167   : > { %v809_v32 = vsel %vm808_vm8, %v803_v16, %v805_v30  ;;  %v855_v33 = vsel %vm854_vm9, %v849_v25, %v851_v31  ;;  %v947_v2 = vld [vmem:[#allocation3] sm:$0xff] }
 0x168   : > { %v813_v34 = vsel %vm1880_vm10, %v809_v32, 0.0  ;;  %859 = vst [vmem:[#allocation3 + $0x20] sm:$0xf] %v855_v33 }
 0x169   : > { %815 = vst [vmem:[#allocation3 + $0x10] sm:$0xf] %v813_v34 }
 0x16a   : > { %v869_v36 = vpop.permute.xlu1 %868  ;;  %v807_v12 = vpop.permute.xlu0 %806 }
 0x16b   : > { %v873_v37 = vsel %vm872_vm11, %v867_v18, %v869_v36  ;;  %v810_v38 = vsel %vm808_vm8, %v805_v30, %v807_v12 }
 0x16c   : > { %v877_v39 = vsel %vm1880_vm10, %v873_v37, 0.0  ;;  %v814_v40 = vsel %vm1890_vm12, %v810_v38, 0.0 }
 0x16d   : > { %v881_v41 = vrot.slane %v877_v39, 4  ;;  %816 = vst [vmem:[#allocation3 + $0x18] sm:$0xf] %v814_v40 }
 0x16e   : > { %v827_v42 = vpop.permute.xlu1 %826  ;;  %v871_v43 = vpop.permute.xlu0 %870 }
 0x16f   : > { %885 = vst [vmem:[#allocation3 + $0x20] sm:$0xf0] %v881_v41  ;;  %v830_v44 = vsel %vm828_vm5, %v825_v17, %v827_v42  ;;  %v874_v45 = vsel %vm872_vm11, %v869_v36, %v871_v43 }
 0x170   : > { %v834_v46 = vsel %vm1857_vm4, %v830_v44, 0.0  ;;  %v878_v47 = vsel %vm1890_vm12, %v874_v45, 0.0  ;;  %v949_v0 = vld [vmem:[#allocation3 + $0x10] sm:$0xff] }
 0x171   : > { %v838_v48 = vrot.slane %v834_v46, 4  ;;  %v882_v49 = vrot.slane %v878_v47, 4  ;;  %v1251_v3 = vpack.c.bf16 %v949_v0, %v947_v2 }
 0x172   : > { %v897_v50 = vpop.permute.xlu1 %896  ;;  %v785_v51 = vpop.permute.xlu0 %784 }
 0x173   : > { %842 = vst [vmem:[#allocation3 + $0x18] sm:$0xf0] %v838_v48  ;;  %886 = vst [vmem:[#allocation3 + $0x28] sm:$0xf0] %v882_v49  ;;  %v900_v52 = vsel %vm898_vm7, %v895_v26, %v897_v50  ;;  %v788_v53 = vsel %vm786_vm6, %v783_v14, %v785_v51 }
 0x174   : > { %v904_v54 = vsel %vm1857_vm4, %v900_v52, 0.0  ;;  %792 = vst [vmem:[#allocation3 + $0x8] sm:$0xf0] %v788_v53 }
 0x175   : > { %906 = vst [vmem:[#allocation3 + $0x38] sm:$0xf] %v904_v54 }
 0x176   : > { %v853_v55 = vpop.permute.xlu1 %852  ;;  %v918_v56 = vpop.permute.xlu0 %917  ;;  %v951_v14 = vld [vmem:[#allocation3 + $0x20] sm:$0xff] }
 0x177   : > { %v856_v57 = vsel %vm854_vm9, %v851_v31, %v853_v55  ;;  %v921_v58 = vsel %vm919_vm13, %v916_v22, %v918_v56 }
 0x178   : > { %860 = vst [vmem:[#allocation3 + $0x28] sm:$0xf] %v856_v57  ;;  %925 = vst [vmem:[#allocation3 + $0x38] sm:$0xf0] %v921_v58 }
 0x17a   : > { %v934_v59 = vpop.permute.xlu1 %933  ;;  %v914_v60 = vpop.permute.xlu0 %913  ;;  %v950_v62 = vld [vmem:[#allocation3 + $0x18] sm:$0xff] }
 0x17b   : > { %v920_v63 = vsel %vm919_vm13, %v914_v60, %v916_v22  ;;  %v948_v1 = vld [vmem:[#allocation3 + $0x8] sm:$0xff] }
 0x17c   : > { %924 = vst [vmem:[#allocation3 + $0x30] sm:$0xf0] %v920_v63  ;;  %v1249_v61 = vpack.c.bf16 %v950_v62, %v948_v1 }
 0x17e   : > { %v932_v4 = vpop.permute.xlu1 %931  ;;  %1250 = vmatprep.subr.bf16.mxu0 %v1249_v61  ;;  %v936_v5 = vpop.permute.xlu0 %935 }
 0x17f   : > { %v938_v6 = vsel %vm937_vm14, %v932_v4, %v934_v59  ;;  %v939_v7 = vsel %vm937_vm14, %v934_v59, %v936_v5  ;;  %1252 = vmatpush1.bf16.msra.mxu0 %v1251_v3  ;;  %v952_v8 = vld [vmem:[#allocation3 + $0x28] sm:$0xff]  ;;  %v954_v9 = vld [vmem:[#allocation3 + $0x38] sm:$0xff] }
 0x180   : > { %v942_v10 = vsel %vm1880_vm10, %v938_v6, 0.0  ;;  %v943_v11 = vsel %vm1890_vm12, %v939_v7, 0.0  ;;  %v1253_v13 = vpack.c.bf16 %v954_v9, %v952_v8 }
 0x181   : > { %944 = vst [vmem:[#allocation3 + $0x40] sm:$0xf] %v942_v10  ;;  %945 = vst [vmem:[#allocation3 + $0x48] sm:$0xf] %v943_v11 }
 0x182   : > { %1254 = vmatprep.subr.bf16.mxu0 %v1253_v13 }
 0x183   : > { %v953_v15 = vld [vmem:[#allocation3 + $0x30] sm:$0xff] }
 0x184   : > { %v1255_v16 = vpack.c.bf16 %v953_v15, %v951_v14 }
 0x186   : > { %1256 = vmatpush1.bf16.msra.mxu0 %v1255_v16 }
 0x188   : > { %v956_v17 = vld [vmem:[#allocation3 + $0x48] sm:$0xf]  ;;  %v955_v18 = vld [vmem:[#allocation3 + $0x40] sm:$0xf] }
 0x189   : > { %1239 = vmatprep.subr.msk.mxu0 %vm967_vm15, %v956_v17 }
 0x18a   : > { %1240 = vmatpush1.msk.msra.mxu0 %vm967_vm15, %v955_v18 }
 0x18b   : > { %1241 = vmatmul.mubr.msk.f32.vlgmr.msra.gmra.mrb[0].mxu0 %vm963_vm0, %v946_v19 }
 0x18f   : > { %v961_v20 = vpop.permute.xlu0 %960 }
 0x25e   : > { %v1040_v21 = vpop.f32.mrb[0].mxu0 }
 0x25f   : > { %v1041_v22 = vadd.f32 %v1040_v21, %v961_v20  ;;  %v1042_v23 = vpop.f32.mrb[1].mxu0 }
 0x260   : > { %v1043_v24 = vadd.f32 %v1042_v23, %v961_v20 }
 0x261   : > { %v1045_v25 = vmax.f32 %v1041_v22, 0.0 }
 0x262   : > { %v1046_v26 = vmax.f32 %v1043_v24, 0.0 }
 0x263   : > { %1047 = vst [vmem:[%s202_s23] sm:$0xff] %v1045_v25 }
 0x264   : > { %1048 = vst [vmem:[%s202_s23 + $0x8] sm:$0xff] %v1046_v26 }
 0x265   : > { %1387 = shalt.err (!%p1384_p5)
}
 0x266   : > { %s1388_s11 = scalar_lea.hbm %s1921_s4, 256  ;;  %s1392_s6 = scalar_lea.hbm %s1973_s3, 512 }
 0x267   : > { %p1389_p4 = scmp.ne.s32.totalorder %s1921_s4, %s1388_s11  ;;  %p1393_p12 = scmp.lt.u32.totalorder %s1921_s4, %s1973_s3 }
 0x268   : > { %p1394_p1 = scmp.lt.u32.totalorder %s1392_s6, %s1388_s11  ;;  %p1396_p8 = scmp.lt.u32.totalorder %s1388_s11, %s1921_s4 }
 0x269   : > { %p1390_p7 = pnand %p1389_p4, %p1991_p9 }
 0x26a   : > { %p1395_p3 = por %p1394_p1, %p1393_p12 }
 0x26b   : > { %p1391_p10 = pneg %p1390_p7 }
 0x26c   : > { %p1397_p11 = por %p1396_p8, %p1395_p3 }
 0x26e   : > { %p1398_p0 = pnand %p1397_p11, %p1391_p10 }
 0x270   : > { %1401 = shalt.err (!%p1398_p0)
}
 0x271   : > { %1259 = dma.vmem_to_hbm [thread:$0]  (%p1991_p9), %s1923_s28, 256, %s1921_s4, %s1050_s5  }
 0x272 PF: > { %s1078_s10 = sand.u32 1, %s1436_s12   ;;  %p1992_p6 = scmp.ne.s32.totalorder %s1978_s27, 0 }
 0x273   : > { %p1993_p13 = scmp.ge.s32.totalorder %s1456_s17, 2  ;;  %s1079_s22 = scalar_lea.sflag [#allocation6], %s1078_s10 }
 0x275   : > { %p1266_p2 = pnand %p1993_p13, %p1992_p6 }
 0x277   : > { %1431 = dma.done.wait (!%p1266_p2), %s1079_s22, 256  }
 0x278   : > { %1433 = vsyncadd (!%p1266_p2), %s1079_s22, 4294967040  ;;  %s19_s17 = sadd.s32 1, %s1456_s17   ;;  %s1994_s12 = smov %s1440_s13 }
 0x279   : > { %p16_p5 = scmp.ge.s32.totalorder %s19_s17, 4   ;;  %s1995_s13 = smov %s1444_s14 }
 0x27a   : > { %s1996_s14 = smov %s1556_s26  ;;  %s1997_s15 = smov %s1452_s16 }
 0x27b   : > { %s1998_s16 = smov %s2000_s20  ;;  %18 = sbr.rel (!%p16_p5) target bundleno = 6 (0x6), region = 95 }
 0x282   :  { %1084 = vsyncpa [#allocation5], 1 }
 0x283   :  { %1086 = vsyncpa [#allocation5 + $0x1], 1 }
 0x284   :  { %1087 = vsyncpa [#allocation6], 1 }
 0x285   :  { %1089 = vsyncpa [#allocation6 + $0x1], 1 }

</bundles_post_ra>
